<compile_context>
chip_gen: v7x
topology: tpu7x:2x2x1
jax: 0.10.0
libtpu: 0.0.40
codegen_flags: <defaults>
</compile_context>

<pallas_src>
import jax
import jax.numpy as jnp
from jax.experimental import pallas as pl
from jax.experimental.pallas import tpu as pltpu


def _round_up(x, m):
    return (x + m - 1) // m * m


def _make_rdb_kernel(in_ch, num_dense, growth, H, W, lead, buf_w):
    """Fused RDB kernel for static layer/channel/spatial sizes."""
    c_final = in_ch + num_dense * growth
    wp = W + 2
    padn = (H + 2) * wp                       # flattened padded spatial size
    n_in = 1 + 2 * num_dense + 7              # x, dense w/b, CA(4), 1x1(2), mask
    inv_hw = 1.0 / float(H * W)

    def kernel(*refs):
        x_ref = refs[0]
        dw = refs[1:1 + num_dense]                        # (9, growth, c_l) each
        db = refs[1 + num_dense:1 + 2 * num_dense]        # (growth, 1) each
        (ca_w1, ca_b1, ca_w2, ca_b2,
         fw, fb, mask_ref) = refs[1 + 2 * num_dense:n_in]
        o_ref = refs[n_in]                                # (1, in_ch, padn)
        B = refs[n_in + 1]                                # VMEM (c_final, buf_w)

        f32 = jnp.float32
        mask = mask_ref[...]                              # (1, padn), 1=interior

        # Zero the lead/tail guard bands (the canonical block [lead, lead+padn)
        # is fully rewritten every grid step, so this keeps the whole buffer
        # well-defined under the "parallel" batch axis on any core).
        B[:, 0:lead] = jnp.zeros((c_final, lead), f32)
        B[:, lead + padn:buf_w] = jnp.zeros((c_final, buf_w - lead - padn), f32)

        # Seed group 0 (= x, already spatially zero-padded by the wrapper).
        x = x_ref[0].astype(f32)                          # (in_ch, padn)
        B[0:in_ch, pl.ds(lead, padn)] = x

        # Incremental CA pooling: fold each group's pooled mean into the first
        # 1x1 conv as soon as the group exists (no re-read of the feature map).
        w1 = ca_w1[...]                                   # (c_mid, c_final)
        h_pre = ca_b1[...] + jnp.dot(
            w1[:, 0:in_ch], jnp.sum(x, axis=1, keepdims=True) * inv_hw,
            preferred_element_type=f32)

        # Residual dense layers: 3x3 conv + bias + ReLU; "concat" = append
        # `growth` new rows (whole-lane-width stores) to the feature buffer.
        c_cur = in_ch
        for l in range(num_dense):
            acc = jnp.zeros((growth, padn), f32)
            for kh in range(3):
                for kw in range(3):
                    # Tap (kh, kw) of every resident channel is just a
                    # lane-offset view of the padded feature buffer.
                    off = lead + (kh - 1) * wp + (kw - 1)
                    operand = B[0:c_cur, pl.ds(off, padn)]      # (c_cur, padn)
                    acc = acc + jnp.dot(dw[l][kh * 3 + kw], operand,
                                        preferred_element_type=f32)
            acc = jnp.maximum(acc + db[l][...], 0.0) * mask     # zero the halo
            B[c_cur:c_cur + growth, pl.ds(lead, padn)] = acc
            h_pre = h_pre + jnp.dot(
                w1[:, c_cur:c_cur + growth],
                jnp.sum(acc, axis=1, keepdims=True) * inv_hw,
                preferred_element_type=f32)
            c_cur += growth

        # CALayer: ReLU -> 1x1 -> sigmoid -> per-channel scale.
        h = jnp.maximum(h_pre, 0.0)                             # (c_mid, 1)
        z = jnp.dot(ca_w2[...], h, preferred_element_type=f32) + ca_b2[...]
        scale = 1.0 / (1.0 + jnp.exp(-z))                       # (c_final, 1)

        feat = B[0:c_final, pl.ds(lead, padn)]                  # (c_final, padn)
        scaled = feat * scale

        # 1x1 fusion conv + bias + residual skip (padded-flat coordinates;
        # halo columns hold junk = fb, discarded by the wrapper slice).
        out = jnp.dot(fw[...], scaled, preferred_element_type=f32) + fb[...] + x
        o_ref[0] = out.astype(o_ref.dtype)

    return kernel


def rdb_forward(x_nchw, params):
    """Pallas implementation of RDB.forward.

    x_nchw: (N, in_ch, H, W) float32 (PyTorch NCHW convention)
    params: PyTorch-layout weights (see rdb_reference).
    returns: (N, in_ch, H, W) float32
    """
    N, in_ch, H, W = x_nchw.shape
    dense_w, dense_b = params["dense_w"], params["dense_b"]
    num_dense = len(dense_w)
    growth = dense_w[0].shape[0]
    c_final = in_ch + num_dense * growth
    c_mid = c_final // 8
    hp, wp = H + 2, W + 2
    padn = hp * wp
    lead = _round_up(W + 3, 128)
    buf_w = lead + padn + lead

    f32 = jnp.float32
    # Only a tiny spatial zero-pad of x (no NCHW<->NHWC transposes anywhere);
    # the kernel works entirely in flattened padded coordinates.
    x_flat = jnp.pad(x_nchw, ((0, 0), (0, 0), (1, 1), (1, 1))).reshape(
        N, in_ch, padn).astype(f32)

    dw_r, db_c = [], []
    for l in range(num_dense):
        c_l = in_ch + l * growth
        # OIHW -> (tap, out_ch, in_ch): tap index t = kh*3 + kw
        w = jnp.transpose(dense_w[l], (2, 3, 0, 1)).reshape(9, growth, c_l)
        dw_r.append(w.astype(f32))
        db_c.append(dense_b[l].reshape(growth, 1).astype(f32))

    ca_w1 = params["ca_w1"][:, :, 0, 0].astype(f32)            # (c_mid, c_final)
    ca_b1 = params["ca_b1"].reshape(c_mid, 1).astype(f32)
    ca_w2 = params["ca_w2"][:, :, 0, 0].astype(f32)            # (c_final, c_mid)
    ca_b2 = params["ca_b2"].reshape(c_final, 1).astype(f32)
    fw = params["conv1x1_w"][:, :, 0, 0].astype(f32)           # (in_ch, c_final)
    fb = params["conv1x1_b"].reshape(in_ch, 1).astype(f32)

    # Structural interior mask (1 inside the original HxW, 0 on the halo).
    mask = jnp.zeros((hp, wp), f32).at[1:H + 1, 1:W + 1].set(1.0).reshape(1, padn)

    inputs = [x_flat] + dw_r + db_c + [ca_w1, ca_b1, ca_w2, ca_b2, fw, fb, mask]

    def const_spec(a):
        return pl.BlockSpec(a.shape, lambda n, _nd=a.ndim: (0,) * _nd)

    in_specs = [pl.BlockSpec((1, in_ch, padn), lambda n: (n, 0, 0))]
    in_specs += [const_spec(a) for a in inputs[1:]]

    # VMEM budget from padded resident sizes (scratch + double-buffered blocks).
    def padded_bytes(shape):
        s = list(shape)
        if len(s) == 1:
            s = [1] + s
        s[-1] = _round_up(s[-1], 128)
        s[-2] = _round_up(s[-2], 8)
        n = 4
        for d in s:
            n *= d
        return n

    est = padded_bytes((c_final, buf_w))
    est += 2 * 2 * padded_bytes((1, in_ch, padn))
    for a in inputs[1:]:
        est += 2 * padded_bytes(a.shape)
    vmem_limit = int(min(48 * 2 ** 20, max(8 * 2 ** 20, 4 * est)))

    kernel = _make_rdb_kernel(in_ch, num_dense, growth, H, W, lead, buf_w)

    out_flat = pl.pallas_call(
        kernel,
        out_shape=jax.ShapeDtypeStruct((N, in_ch, padn), x_nchw.dtype),
        grid_spec=pltpu.PrefetchScalarGridSpec(
            num_scalar_prefetch=0,
            grid=(N,),
            in_specs=in_specs,
            out_specs=pl.BlockSpec((1, in_ch, padn), lambda n: (n, 0, 0)),
            scratch_shapes=[pltpu.VMEM((c_final, buf_w), jnp.float32)],
        ),
        compiler_params=pltpu.CompilerParams(
            dimension_semantics=("parallel",),
            vmem_limit_bytes=vmem_limit),
    )(*inputs)

    out = out_flat.reshape(N, in_ch, hp, wp)[:, :, 1:H + 1, 1:W + 1]
    return out


def rdb_reference(x, params):
    """Pure-JAX reference mirroring the PyTorch module."""
    def conv2d(inp, w, b, pad):
        y = jax.lax.conv_general_dilated(
            inp, w, window_strides=(1, 1), padding=((pad, pad), (pad, pad)),
            dimension_numbers=("NCHW", "OIHW", "NCHW"))
        return y + b.reshape(1, -1, 1, 1)

    out = x
    for w, b in zip(params["dense_w"], params["dense_b"]):
        y = jax.nn.relu(conv2d(out, w, b, 1))
        out = jnp.concatenate([out, y], axis=1)
    y = jnp.mean(out, axis=(2, 3), keepdims=True)
    y = jax.nn.relu(conv2d(y, params["ca_w1"], params["ca_b1"], 0))
    y = jax.nn.sigmoid(conv2d(y, params["ca_w2"], params["ca_b2"], 0))
    out = out * y
    out = conv2d(out, params["conv1x1_w"], params["conv1x1_b"], 0)
    return out + x


if __name__ == "__main__":
    key = jax.random.PRNGKey(0)
    N, in_ch, H, W = 2, 4, 16, 16
    num_dense, growth = 3, 4
    c_final = in_ch + num_dense * growth
    c_mid = c_final // 8

    keys = iter(jax.random.split(key, 2 * num_dense + 7))

    def init_conv(k, o, i, kh, kw):
        fan_in = i * kh * kw
        return jax.random.normal(k, (o, i, kh, kw), jnp.float32) * (2.0 / fan_in) ** 0.5

    params = {"dense_w": [], "dense_b": []}
    for l in range(num_dense):
        c_l = in_ch + l * growth
        params["dense_w"].append(init_conv(next(keys), growth, c_l, 3, 3))
        params["dense_b"].append(jax.random.normal(next(keys), (growth,), jnp.float32) * 0.1)
    params["ca_w1"] = init_conv(next(keys), c_mid, c_final, 1, 1)
    params["ca_b1"] = jax.random.normal(next(keys), (c_mid,), jnp.float32) * 0.1
    params["ca_w2"] = init_conv(next(keys), c_final, c_mid, 1, 1)
    params["ca_b2"] = jax.random.normal(next(keys), (c_final,), jnp.float32) * 0.1
    params["conv1x1_w"] = init_conv(next(keys), in_ch, c_final, 1, 1)
    params["conv1x1_b"] = jax.random.normal(next(keys), (in_ch,), jnp.float32) * 0.1

    x = jax.random.normal(next(keys), (N, in_ch, H, W), jnp.float32)

    out = rdb_forward(x, params)
    out = jax.block_until_ready(out)

    ref = rdb_reference(x, params)
    assert out.shape == (N, in_ch, H, W)
    err = float(jnp.max(jnp.abs(out - ref)))
    assert jnp.allclose(out, ref, atol=1e-4, rtol=1e-4), err

    print("KERNEL_OK")
</pallas_src>

<mosaic_0001>
module attributes {stable_mosaic.version = 11 : i64} {
  func.func @kernel(%arg0: i32, %arg1: memref<1x4x324xf32, #tpu.memory_space<vmem>>, %arg2: memref<9x4x4xf32, #tpu.memory_space<vmem>>, %arg3: memref<9x4x8xf32, #tpu.memory_space<vmem>>, %arg4: memref<9x4x12xf32, #tpu.memory_space<vmem>>, %arg5: memref<4x1xf32, #tpu.memory_space<vmem>>, %arg6: memref<4x1xf32, #tpu.memory_space<vmem>>, %arg7: memref<4x1xf32, #tpu.memory_space<vmem>>, %arg8: memref<2x16xf32, #tpu.memory_space<vmem>>, %arg9: memref<2x1xf32, #tpu.memory_space<vmem>>, %arg10: memref<16x2xf32, #tpu.memory_space<vmem>>, %arg11: memref<16x1xf32, #tpu.memory_space<vmem>>, %arg12: memref<4x16xf32, #tpu.memory_space<vmem>>, %arg13: memref<4x1xf32, #tpu.memory_space<vmem>>, %arg14: memref<1x324xf32, #tpu.memory_space<vmem>>, %arg15: memref<1x4x324xf32, #tpu.memory_space<vmem>>, %arg16: memref<16x580xf32, #tpu.memory_space<vmem>>) attributes {dimension_semantics = [#tpu.dimension_semantics<parallel>], iteration_bounds = array<i64: 2>, scalar_prefetch = 0 : i64, scratch_operands = 1 : i64, tpu.core_type = #tpu.core_type<tc>, window_params = [{transform_indices = @transform_0, window_bounds = array<i64: 1, 4, 324>}, {pipeline_mode = #tpu.pipeline_mode<synchronous>, transform_indices = @transform_1, window_bounds = array<i64: 9, 4, 4>}, {pipeline_mode = #tpu.pipeline_mode<synchronous>, transform_indices = @transform_2, window_bounds = array<i64: 9, 4, 8>}, {pipeline_mode = #tpu.pipeline_mode<synchronous>, transform_indices = @transform_3, window_bounds = array<i64: 9, 4, 12>}, {pipeline_mode = #tpu.pipeline_mode<synchronous>, transform_indices = @transform_4, window_bounds = array<i64: 4, 1>}, {pipeline_mode = #tpu.pipeline_mode<synchronous>, transform_indices = @transform_5, window_bounds = array<i64: 4, 1>}, {pipeline_mode = #tpu.pipeline_mode<synchronous>, transform_indices = @transform_6, window_bounds = array<i64: 4, 1>}, {pipeline_mode = #tpu.pipeline_mode<synchronous>, transform_indices = @transform_7, window_bounds = array<i64: 2, 16>}, {pipeline_mode = #tpu.pipeline_mode<synchronous>, transform_indices = @transform_8, window_bounds = array<i64: 2, 1>}, {pipeline_mode = #tpu.pipeline_mode<synchronous>, transform_indices = @transform_9, window_bounds = array<i64: 16, 2>}, {pipeline_mode = #tpu.pipeline_mode<synchronous>, transform_indices = @transform_10, window_bounds = array<i64: 16, 1>}, {pipeline_mode = #tpu.pipeline_mode<synchronous>, transform_indices = @transform_11, window_bounds = array<i64: 4, 16>}, {pipeline_mode = #tpu.pipeline_mode<synchronous>, transform_indices = @transform_12, window_bounds = array<i64: 4, 1>}, {pipeline_mode = #tpu.pipeline_mode<synchronous>, transform_indices = @transform_13, window_bounds = array<i64: 1, 324>}, {transform_indices = @transform_14, window_bounds = array<i64: 1, 4, 324>}]} {
    %c0 = arith.constant 0 : index
    %c0_0 = arith.constant 0 : index
    %0 = vector.load %arg14[%c0, %c0_0] : memref<1x324xf32, #tpu.memory_space<vmem>>, vector<1x324xf32>
    %cst = arith.constant 0.000000e+00 : f32
    %1 = vector.broadcast %cst : f32 to vector<16x128xf32>
    %c0_1 = arith.constant 0 : index
    %c0_2 = arith.constant 0 : index
    %2 = vector.load %arg16[%c0_1, %c0_2] : memref<16x580xf32, #tpu.memory_space<vmem>>, vector<16x128xf32>
    tpu.vector_store %arg16[%c0_1, %c0_2], %1 {strides = array<i32>} : memref<16x580xf32, #tpu.memory_space<vmem>>, vector<16x128xf32>,
    %cst_3 = arith.constant 0.000000e+00 : f32
    %3 = vector.broadcast %cst_3 : f32 to vector<16x128xf32>
    %c0_4 = arith.constant 0 : index
    %c452 = arith.constant 452 : index
    %4 = vector.load %arg16[%c0_4, %c452] : memref<16x580xf32, #tpu.memory_space<vmem>>, vector<16x128xf32>
    tpu.vector_store %arg16[%c0_4, %c452], %3 {strides = array<i32>} : memref<16x580xf32, #tpu.memory_space<vmem>>, vector<16x128xf32>,
    %c0_5 = arith.constant 0 : index
    %c0_6 = arith.constant 0 : index
    %c0_7 = arith.constant 0 : index
    %5 = vector.load %arg1[%c0_5, %c0_6, %c0_7] : memref<1x4x324xf32, #tpu.memory_space<vmem>>, vector<1x4x324xf32>
    %6 = vector.shape_cast %5 : vector<1x4x324xf32> to vector<4x324xf32>
    %c0_8 = arith.constant 0 : index
    %c128 = arith.constant 128 : index
    %7 = vector.load %arg16[%c0_8, %c128] : memref<16x580xf32, #tpu.memory_space<vmem>>, vector<4x324xf32>
    tpu.vector_store %arg16[%c0_8, %c128], %6 {strides = array<i32>} : memref<16x580xf32, #tpu.memory_space<vmem>>, vector<4x324xf32>,
    %c0_9 = arith.constant 0 : index
    %c0_10 = arith.constant 0 : index
    %8 = vector.load %arg8[%c0_9, %c0_10] : memref<2x16xf32, #tpu.memory_space<vmem>>, vector<2x16xf32>
    %c0_11 = arith.constant 0 : index
    %c0_12 = arith.constant 0 : index
    %9 = vector.load %arg9[%c0_11, %c0_12] : memref<2x1xf32, #tpu.memory_space<vmem>>, vector<2x1xf32>
    %10 = vector.extract_strided_slice %8 {offsets = [0, 0], sizes = [2, 4], strides = [1, 1]} : vector<2x16xf32> to vector<2x4xf32>
    %cst_13 = arith.constant dense<0.000000e+00> : vector<4xf32>
    %11 = vector.multi_reduction <add>, %6, %cst_13 [1] : vector<4x324xf32> to vector<4xf32>
    %12 = vector.shape_cast %11 : vector<4xf32> to vector<4x1xf32>
    %cst_14 = arith.constant 3.906250e-03 : f32
    %13 = vector.broadcast %cst_14 : f32 to vector<4x1xf32>
    %14 = arith.mulf %12, %13 : vector<4x1xf32>
    %cst_15 = arith.constant dense<0.000000e+00> : vector<2x1xf32>
    %15 = tpu.matmul %10, %14, %cst_15 {dimension_numbers = #tpu.dot_dimension_numbers<[1], [0], [0], [1], [0, 0, 1, 1], [], []>} : vector<2x4xf32>, vector<4x1xf32>, vector<2x1xf32> -> vector<2x1xf32>
    %16 = arith.addf %9, %15 : vector<2x1xf32>
    %cst_16 = arith.constant 0.000000e+00 : f32
    %17 = vector.broadcast %cst_16 : f32 to vector<4x324xf32>
    %c0_17 = arith.constant 0 : index
    %c109 = arith.constant 109 : index
    %18 = vector.load %arg16[%c0_17, %c109] : memref<16x580xf32, #tpu.memory_space<vmem>>, vector<4x324xf32>
    %c0_18 = arith.constant 0 : index
    %c0_19 = arith.constant 0 : index
    %c0_20 = arith.constant 0 : index
    %19 = vector.load %arg2[%c0_18, %c0_19, %c0_20] : memref<9x4x4xf32, #tpu.memory_space<vmem>>, vector<1x4x4xf32>
    %20 = vector.shape_cast %19 : vector<1x4x4xf32> to vector<4x4xf32>
    %cst_21 = arith.constant dense<0.000000e+00> : vector<4x324xf32>
    %21 = tpu.matmul %20, %18, %cst_21 {dimension_numbers = #tpu.dot_dimension_numbers<[1], [0], [0], [1], [0, 0, 1, 1], [], []>} : vector<4x4xf32>, vector<4x324xf32>, vector<4x324xf32> -> vector<4x324xf32>
    %22 = arith.addf %17, %21 : vector<4x324xf32>
    %c0_22 = arith.constant 0 : index
    %c110 = arith.constant 110 : index
    %23 = vector.load %arg16[%c0_22, %c110] : memref<16x580xf32, #tpu.memory_space<vmem>>, vector<4x324xf32>
    %c1 = arith.constant 1 : index
    %c0_23 = arith.constant 0 : index
    %c0_24 = arith.constant 0 : index
    %24 = vector.load %arg2[%c1, %c0_23, %c0_24] : memref<9x4x4xf32, #tpu.memory_space<vmem>>, vector<1x4x4xf32>
    %25 = vector.shape_cast %24 : vector<1x4x4xf32> to vector<4x4xf32>
    %cst_25 = arith.constant dense<0.000000e+00> : vector<4x324xf32>
    %26 = tpu.matmul %25, %23, %cst_25 {dimension_numbers = #tpu.dot_dimension_numbers<[1], [0], [0], [1], [0, 0, 1, 1], [], []>} : vector<4x4xf32>, vector<4x324xf32>, vector<4x324xf32> -> vector<4x324xf32>
    %27 = arith.addf %22, %26 : vector<4x324xf32>
    %c0_26 = arith.constant 0 : index
    %c111 = arith.constant 111 : index
    %28 = vector.load %arg16[%c0_26, %c111] : memref<16x580xf32, #tpu.memory_space<vmem>>, vector<4x324xf32>
    %c2 = arith.constant 2 : index
    %c0_27 = arith.constant 0 : index
    %c0_28 = arith.constant 0 : index
    %29 = vector.load %arg2[%c2, %c0_27, %c0_28] : memref<9x4x4xf32, #tpu.memory_space<vmem>>, vector<1x4x4xf32>
    %30 = vector.shape_cast %29 : vector<1x4x4xf32> to vector<4x4xf32>
    %cst_29 = arith.constant dense<0.000000e+00> : vector<4x324xf32>
    %31 = tpu.matmul %30, %28, %cst_29 {dimension_numbers = #tpu.dot_dimension_numbers<[1], [0], [0], [1], [0, 0, 1, 1], [], []>} : vector<4x4xf32>, vector<4x324xf32>, vector<4x324xf32> -> vector<4x324xf32>
    %32 = arith.addf %27, %31 : vector<4x324xf32>
    %c0_30 = arith.constant 0 : index
    %c127 = arith.constant 127 : index
    %33 = vector.load %arg16[%c0_30, %c127] : memref<16x580xf32, #tpu.memory_space<vmem>>, vector<4x324xf32>
    %c3 = arith.constant 3 : index
    %c0_31 = arith.constant 0 : index
    %c0_32 = arith.constant 0 : index
    %34 = vector.load %arg2[%c3, %c0_31, %c0_32] : memref<9x4x4xf32, #tpu.memory_space<vmem>>, vector<1x4x4xf32>
    %35 = vector.shape_cast %34 : vector<1x4x4xf32> to vector<4x4xf32>
    %cst_33 = arith.constant dense<0.000000e+00> : vector<4x324xf32>
    %36 = tpu.matmul %35, %33, %cst_33 {dimension_numbers = #tpu.dot_dimension_numbers<[1], [0], [0], [1], [0, 0, 1, 1], [], []>} : vector<4x4xf32>, vector<4x324xf32>, vector<4x324xf32> -> vector<4x324xf32>
    %37 = arith.addf %32, %36 : vector<4x324xf32>
    %c0_34 = arith.constant 0 : index
    %c128_35 = arith.constant 128 : index
    %38 = vector.load %arg16[%c0_34, %c128_35] : memref<16x580xf32, #tpu.memory_space<vmem>>, vector<4x324xf32>
    %c4 = arith.constant 4 : index
    %c0_36 = arith.constant 0 : index
    %c0_37 = arith.constant 0 : index
    %39 = vector.load %arg2[%c4, %c0_36, %c0_37] : memref<9x4x4xf32, #tpu.memory_space<vmem>>, vector<1x4x4xf32>
    %40 = vector.shape_cast %39 : vector<1x4x4xf32> to vector<4x4xf32>
    %cst_38 = arith.constant dense<0.000000e+00> : vector<4x324xf32>
    %41 = tpu.matmul %40, %38, %cst_38 {dimension_numbers = #tpu.dot_dimension_numbers<[1], [0], [0], [1], [0, 0, 1, 1], [], []>} : vector<4x4xf32>, vector<4x324xf32>, vector<4x324xf32> -> vector<4x324xf32>
    %42 = arith.addf %37, %41 : vector<4x324xf32>
    %c0_39 = arith.constant 0 : index
    %c129 = arith.constant 129 : index
    %43 = vector.load %arg16[%c0_39, %c129] : memref<16x580xf32, #tpu.memory_space<vmem>>, vector<4x324xf32>
    %c5 = arith.constant 5 : index
    %c0_40 = arith.constant 0 : index
    %c0_41 = arith.constant 0 : index
    %44 = vector.load %arg2[%c5, %c0_40, %c0_41] : memref<9x4x4xf32, #tpu.memory_space<vmem>>, vector<1x4x4xf32>
    %45 = vector.shape_cast %44 : vector<1x4x4xf32> to vector<4x4xf32>
    %cst_42 = arith.constant dense<0.000000e+00> : vector<4x324xf32>
    %46 = tpu.matmul %45, %43, %cst_42 {dimension_numbers = #tpu.dot_dimension_numbers<[1], [0], [0], [1], [0, 0, 1, 1], [], []>} : vector<4x4xf32>, vector<4x324xf32>, vector<4x324xf32> -> vector<4x324xf32>
    %47 = arith.addf %42, %46 : vector<4x324xf32>
    %c0_43 = arith.constant 0 : index
    %c145 = arith.constant 145 : index
    %48 = vector.load %arg16[%c0_43, %c145] : memref<16x580xf32, #tpu.memory_space<vmem>>, vector<4x324xf32>
    %c6 = arith.constant 6 : index
    %c0_44 = arith.constant 0 : index
    %c0_45 = arith.constant 0 : index
    %49 = vector.load %arg2[%c6, %c0_44, %c0_45] : memref<9x4x4xf32, #tpu.memory_space<vmem>>, vector<1x4x4xf32>
    %50 = vector.shape_cast %49 : vector<1x4x4xf32> to vector<4x4xf32>
    %cst_46 = arith.constant dense<0.000000e+00> : vector<4x324xf32>
    %51 = tpu.matmul %50, %48, %cst_46 {dimension_numbers = #tpu.dot_dimension_numbers<[1], [0], [0], [1], [0, 0, 1, 1], [], []>} : vector<4x4xf32>, vector<4x324xf32>, vector<4x324xf32> -> vector<4x324xf32>
    %52 = arith.addf %47, %51 : vector<4x324xf32>
    %c0_47 = arith.constant 0 : index
    %c146 = arith.constant 146 : index
    %53 = vector.load %arg16[%c0_47, %c146] : memref<16x580xf32, #tpu.memory_space<vmem>>, vector<4x324xf32>
    %c7 = arith.constant 7 : index
    %c0_48 = arith.constant 0 : index
    %c0_49 = arith.constant 0 : index
    %54 = vector.load %arg2[%c7, %c0_48, %c0_49] : memref<9x4x4xf32, #tpu.memory_space<vmem>>, vector<1x4x4xf32>
    %55 = vector.shape_cast %54 : vector<1x4x4xf32> to vector<4x4xf32>
    %cst_50 = arith.constant dense<0.000000e+00> : vector<4x324xf32>
    %56 = tpu.matmul %55, %53, %cst_50 {dimension_numbers = #tpu.dot_dimension_numbers<[1], [0], [0], [1], [0, 0, 1, 1], [], []>} : vector<4x4xf32>, vector<4x324xf32>, vector<4x324xf32> -> vector<4x324xf32>
    %57 = arith.addf %52, %56 : vector<4x324xf32>
    %c0_51 = arith.constant 0 : index
    %c147 = arith.constant 147 : index
    %58 = vector.load %arg16[%c0_51, %c147] : memref<16x580xf32, #tpu.memory_space<vmem>>, vector<4x324xf32>
    %c8 = arith.constant 8 : index
    %c0_52 = arith.constant 0 : index
    %c0_53 = arith.constant 0 : index
    %59 = vector.load %arg2[%c8, %c0_52, %c0_53] : memref<9x4x4xf32, #tpu.memory_space<vmem>>, vector<1x4x4xf32>
    %60 = vector.shape_cast %59 : vector<1x4x4xf32> to vector<4x4xf32>
    %cst_54 = arith.constant dense<0.000000e+00> : vector<4x324xf32>
    %61 = tpu.matmul %60, %58, %cst_54 {dimension_numbers = #tpu.dot_dimension_numbers<[1], [0], [0], [1], [0, 0, 1, 1], [], []>} : vector<4x4xf32>, vector<4x324xf32>, vector<4x324xf32> -> vector<4x324xf32>
    %62 = arith.addf %57, %61 : vector<4x324xf32>
    %c0_55 = arith.constant 0 : index
    %c0_56 = arith.constant 0 : index
    %63 = vector.load %arg5[%c0_55, %c0_56] : memref<4x1xf32, #tpu.memory_space<vmem>>, vector<4x1xf32>
    %64 = vector.broadcast %63 : vector<4x1xf32> to vector<4x324xf32>
    %65 = arith.addf %62, %64 : vector<4x324xf32>
    %cst_57 = arith.constant 0.000000e+00 : f32
    %66 = vector.broadcast %cst_57 : f32 to vector<4x324xf32>
    %67 = arith.maximumf %65, %66 : vector<4x324xf32>
    %68 = vector.broadcast %0 : vector<1x324xf32> to vector<4x324xf32>
    %69 = arith.mulf %67, %68 : vector<4x324xf32>
    %c4_58 = arith.constant 4 : index
    %c128_59 = arith.constant 128 : index
    %70 = vector.load %arg16[%c4_58, %c128_59] : memref<16x580xf32, #tpu.memory_space<vmem>>, vector<4x324xf32>
    tpu.vector_store %arg16[%c4_58, %c128_59], %69 {strides = array<i32>} : memref<16x580xf32, #tpu.memory_space<vmem>>, vector<4x324xf32>,
    %71 = vector.extract_strided_slice %8 {offsets = [0, 4], sizes = [2, 4], strides = [1, 1]} : vector<2x16xf32> to vector<2x4xf32>
    %cst_60 = arith.constant dense<0.000000e+00> : vector<4xf32>
    %72 = vector.multi_reduction <add>, %69, %cst_60 [1] : vector<4x324xf32> to vector<4xf32>
    %73 = vector.shape_cast %72 : vector<4xf32> to vector<4x1xf32>
    %cst_61 = arith.constant 3.906250e-03 : f32
    %74 = vector.broadcast %cst_61 : f32 to vector<4x1xf32>
    %75 = arith.mulf %73, %74 : vector<4x1xf32>
    %cst_62 = arith.constant dense<0.000000e+00> : vector<2x1xf32>
    %76 = tpu.matmul %71, %75, %cst_62 {dimension_numbers = #tpu.dot_dimension_numbers<[1], [0], [0], [1], [0, 0, 1, 1], [], []>} : vector<2x4xf32>, vector<4x1xf32>, vector<2x1xf32> -> vector<2x1xf32>
    %77 = arith.addf %16, %76 : vector<2x1xf32>
    %cst_63 = arith.constant 0.000000e+00 : f32
    %78 = vector.broadcast %cst_63 : f32 to vector<4x324xf32>
    %c0_64 = arith.constant 0 : index
    %c109_65 = arith.constant 109 : index
    %79 = vector.load %arg16[%c0_64, %c109_65] : memref<16x580xf32, #tpu.memory_space<vmem>>, vector<8x324xf32>
    %c0_66 = arith.constant 0 : index
    %c0_67 = arith.constant 0 : index
    %c0_68 = arith.constant 0 : index
    %80 = vector.load %arg3[%c0_66, %c0_67, %c0_68] : memref<9x4x8xf32, #tpu.memory_space<vmem>>, vector<1x4x8xf32>
    %81 = vector.shape_cast %80 : vector<1x4x8xf32> to vector<4x8xf32>
    %cst_69 = arith.constant dense<0.000000e+00> : vector<4x324xf32>
    %82 = tpu.matmul %81, %79, %cst_69 {dimension_numbers = #tpu.dot_dimension_numbers<[1], [0], [0], [1], [0, 0, 1, 1], [], []>} : vector<4x8xf32>, vector<8x324xf32>, vector<4x324xf32> -> vector<4x324xf32>
    %83 = arith.addf %78, %82 : vector<4x324xf32>
    %c0_70 = arith.constant 0 : index
    %c110_71 = arith.constant 110 : index
    %84 = vector.load %arg16[%c0_70, %c110_71] : memref<16x580xf32, #tpu.memory_space<vmem>>, vector<8x324xf32>
    %c1_72 = arith.constant 1 : index
    %c0_73 = arith.constant 0 : index
    %c0_74 = arith.constant 0 : index
    %85 = vector.load %arg3[%c1_72, %c0_73, %c0_74] : memref<9x4x8xf32, #tpu.memory_space<vmem>>, vector<1x4x8xf32>
    %86 = vector.shape_cast %85 : vector<1x4x8xf32> to vector<4x8xf32>
    %cst_75 = arith.constant dense<0.000000e+00> : vector<4x324xf32>
    %87 = tpu.matmul %86, %84, %cst_75 {dimension_numbers = #tpu.dot_dimension_numbers<[1], [0], [0], [1], [0, 0, 1, 1], [], []>} : vector<4x8xf32>, vector<8x324xf32>, vector<4x324xf32> -> vector<4x324xf32>
    %88 = arith.addf %83, %87 : vector<4x324xf32>
    %c0_76 = arith.constant 0 : index
    %c111_77 = arith.constant 111 : index
    %89 = vector.load %arg16[%c0_76, %c111_77] : memref<16x580xf32, #tpu.memory_space<vmem>>, vector<8x324xf32>
    %c2_78 = arith.constant 2 : index
    %c0_79 = arith.constant 0 : index
    %c0_80 = arith.constant 0 : index
    %90 = vector.load %arg3[%c2_78, %c0_79, %c0_80] : memref<9x4x8xf32, #tpu.memory_space<vmem>>, vector<1x4x8xf32>
    %91 = vector.shape_cast %90 : vector<1x4x8xf32> to vector<4x8xf32>
    %cst_81 = arith.constant dense<0.000000e+00> : vector<4x324xf32>
    %92 = tpu.matmul %91, %89, %cst_81 {dimension_numbers = #tpu.dot_dimension_numbers<[1], [0], [0], [1], [0, 0, 1, 1], [], []>} : vector<4x8xf32>, vector<8x324xf32>, vector<4x324xf32> -> vector<4x324xf32>
    %93 = arith.addf %88, %92 : vector<4x324xf32>
    %c0_82 = arith.constant 0 : index
    %c127_83 = arith.constant 127 : index
    %94 = vector.load %arg16[%c0_82, %c127_83] : memref<16x580xf32, #tpu.memory_space<vmem>>, vector<8x324xf32>
    %c3_84 = arith.constant 3 : index
    %c0_85 = arith.constant 0 : index
    %c0_86 = arith.constant 0 : index
    %95 = vector.load %arg3[%c3_84, %c0_85, %c0_86] : memref<9x4x8xf32, #tpu.memory_space<vmem>>, vector<1x4x8xf32>
    %96 = vector.shape_cast %95 : vector<1x4x8xf32> to vector<4x8xf32>
    %cst_87 = arith.constant dense<0.000000e+00> : vector<4x324xf32>
    %97 = tpu.matmul %96, %94, %cst_87 {dimension_numbers = #tpu.dot_dimension_numbers<[1], [0], [0], [1], [0, 0, 1, 1], [], []>} : vector<4x8xf32>, vector<8x324xf32>, vector<4x324xf32> -> vector<4x324xf32>
    %98 = arith.addf %93, %97 : vector<4x324xf32>
    %c0_88 = arith.constant 0 : index
    %c128_89 = arith.constant 128 : index
    %99 = vector.load %arg16[%c0_88, %c128_89] : memref<16x580xf32, #tpu.memory_space<vmem>>, vector<8x324xf32>
    %c4_90 = arith.constant 4 : index
    %c0_91 = arith.constant 0 : index
    %c0_92 = arith.constant 0 : index
    %100 = vector.load %arg3[%c4_90, %c0_91, %c0_92] : memref<9x4x8xf32, #tpu.memory_space<vmem>>, vector<1x4x8xf32>
    %101 = vector.shape_cast %100 : vector<1x4x8xf32> to vector<4x8xf32>
    %cst_93 = arith.constant dense<0.000000e+00> : vector<4x324xf32>
    %102 = tpu.matmul %101, %99, %cst_93 {dimension_numbers = #tpu.dot_dimension_numbers<[1], [0], [0], [1], [0, 0, 1, 1], [], []>} : vector<4x8xf32>, vector<8x324xf32>, vector<4x324xf32> -> vector<4x324xf32>
    %103 = arith.addf %98, %102 : vector<4x324xf32>
    %c0_94 = arith.constant 0 : index
    %c129_95 = arith.constant 129 : index
    %104 = vector.load %arg16[%c0_94, %c129_95] : memref<16x580xf32, #tpu.memory_space<vmem>>, vector<8x324xf32>
    %c5_96 = arith.constant 5 : index
    %c0_97 = arith.constant 0 : index
    %c0_98 = arith.constant 0 : index
    %105 = vector.load %arg3[%c5_96, %c0_97, %c0_98] : memref<9x4x8xf32, #tpu.memory_space<vmem>>, vector<1x4x8xf32>
    %106 = vector.shape_cast %105 : vector<1x4x8xf32> to vector<4x8xf32>
    %cst_99 = arith.constant dense<0.000000e+00> : vector<4x324xf32>
    %107 = tpu.matmul %106, %104, %cst_99 {dimension_numbers = #tpu.dot_dimension_numbers<[1], [0], [0], [1], [0, 0, 1, 1], [], []>} : vector<4x8xf32>, vector<8x324xf32>, vector<4x324xf32> -> vector<4x324xf32>
    %108 = arith.addf %103, %107 : vector<4x324xf32>
    %c0_100 = arith.constant 0 : index
    %c145_101 = arith.constant 145 : index
    %109 = vector.load %arg16[%c0_100, %c145_101] : memref<16x580xf32, #tpu.memory_space<vmem>>, vector<8x324xf32>
    %c6_102 = arith.constant 6 : index
    %c0_103 = arith.constant 0 : index
    %c0_104 = arith.constant 0 : index
    %110 = vector.load %arg3[%c6_102, %c0_103, %c0_104] : memref<9x4x8xf32, #tpu.memory_space<vmem>>, vector<1x4x8xf32>
    %111 = vector.shape_cast %110 : vector<1x4x8xf32> to vector<4x8xf32>
    %cst_105 = arith.constant dense<0.000000e+00> : vector<4x324xf32>
    %112 = tpu.matmul %111, %109, %cst_105 {dimension_numbers = #tpu.dot_dimension_numbers<[1], [0], [0], [1], [0, 0, 1, 1], [], []>} : vector<4x8xf32>, vector<8x324xf32>, vector<4x324xf32> -> vector<4x324xf32>
    %113 = arith.addf %108, %112 : vector<4x324xf32>
    %c0_106 = arith.constant 0 : index
    %c146_107 = arith.constant 146 : index
    %114 = vector.load %arg16[%c0_106, %c146_107] : memref<16x580xf32, #tpu.memory_space<vmem>>, vector<8x324xf32>
    %c7_108 = arith.constant 7 : index
    %c0_109 = arith.constant 0 : index
    %c0_110 = arith.constant 0 : index
    %115 = vector.load %arg3[%c7_108, %c0_109, %c0_110] : memref<9x4x8xf32, #tpu.memory_space<vmem>>, vector<1x4x8xf32>
    %116 = vector.shape_cast %115 : vector<1x4x8xf32> to vector<4x8xf32>
    %cst_111 = arith.constant dense<0.000000e+00> : vector<4x324xf32>
    %117 = tpu.matmul %116, %114, %cst_111 {dimension_numbers = #tpu.dot_dimension_numbers<[1], [0], [0], [1], [0, 0, 1, 1], [], []>} : vector<4x8xf32>, vector<8x324xf32>, vector<4x324xf32> -> vector<4x324xf32>
    %118 = arith.addf %113, %117 : vector<4x324xf32>
    %c0_112 = arith.constant 0 : index
    %c147_113 = arith.constant 147 : index
    %119 = vector.load %arg16[%c0_112, %c147_113] : memref<16x580xf32, #tpu.memory_space<vmem>>, vector<8x324xf32>
    %c8_114 = arith.constant 8 : index
    %c0_115 = arith.constant 0 : index
    %c0_116 = arith.constant 0 : index
    %120 = vector.load %arg3[%c8_114, %c0_115, %c0_116] : memref<9x4x8xf32, #tpu.memory_space<vmem>>, vector<1x4x8xf32>
    %121 = vector.shape_cast %120 : vector<1x4x8xf32> to vector<4x8xf32>
    %cst_117 = arith.constant dense<0.000000e+00> : vector<4x324xf32>
    %122 = tpu.matmul %121, %119, %cst_117 {dimension_numbers = #tpu.dot_dimension_numbers<[1], [0], [0], [1], [0, 0, 1, 1], [], []>} : vector<4x8xf32>, vector<8x324xf32>, vector<4x324xf32> -> vector<4x324xf32>
    %123 = arith.addf %118, %122 : vector<4x324xf32>
    %c0_118 = arith.constant 0 : index
    %c0_119 = arith.constant 0 : index
    %124 = vector.load %arg6[%c0_118, %c0_119] : memref<4x1xf32, #tpu.memory_space<vmem>>, vector<4x1xf32>
    %125 = vector.broadcast %124 : vector<4x1xf32> to vector<4x324xf32>
    %126 = arith.addf %123, %125 : vector<4x324xf32>
    %cst_120 = arith.constant 0.000000e+00 : f32
    %127 = vector.broadcast %cst_120 : f32 to vector<4x324xf32>
    %128 = arith.maximumf %126, %127 : vector<4x324xf32>
    %129 = vector.broadcast %0 : vector<1x324xf32> to vector<4x324xf32>
    %130 = arith.mulf %128, %129 : vector<4x324xf32>
    %c8_121 = arith.constant 8 : index
    %c128_122 = arith.constant 128 : index
    %131 = vector.load %arg16[%c8_121, %c128_122] : memref<16x580xf32, #tpu.memory_space<vmem>>, vector<4x324xf32>
    tpu.vector_store %arg16[%c8_121, %c128_122], %130 {strides = array<i32>} : memref<16x580xf32, #tpu.memory_space<vmem>>, vector<4x324xf32>,
    %132 = vector.extract_strided_slice %8 {offsets = [0, 8], sizes = [2, 4], strides = [1, 1]} : vector<2x16xf32> to vector<2x4xf32>
    %cst_123 = arith.constant dense<0.000000e+00> : vector<4xf32>
    %133 = vector.multi_reduction <add>, %130, %cst_123 [1] : vector<4x324xf32> to vector<4xf32>
    %134 = vector.shape_cast %133 : vector<4xf32> to vector<4x1xf32>
    %cst_124 = arith.constant 3.906250e-03 : f32
    %135 = vector.broadcast %cst_124 : f32 to vector<4x1xf32>
    %136 = arith.mulf %134, %135 : vector<4x1xf32>
    %cst_125 = arith.constant dense<0.000000e+00> : vector<2x1xf32>
    %137 = tpu.matmul %132, %136, %cst_125 {dimension_numbers = #tpu.dot_dimension_numbers<[1], [0], [0], [1], [0, 0, 1, 1], [], []>} : vector<2x4xf32>, vector<4x1xf32>, vector<2x1xf32> -> vector<2x1xf32>
    %138 = arith.addf %77, %137 : vector<2x1xf32>
    %cst_126 = arith.constant 0.000000e+00 : f32
    %139 = vector.broadcast %cst_126 : f32 to vector<4x324xf32>
    %c0_127 = arith.constant 0 : index
    %c109_128 = arith.constant 109 : index
    %140 = vector.load %arg16[%c0_127, %c109_128] : memref<16x580xf32, #tpu.memory_space<vmem>>, vector<12x324xf32>
    %c0_129 = arith.constant 0 : index
    %c0_130 = arith.constant 0 : index
    %c0_131 = arith.constant 0 : index
    %141 = vector.load %arg4[%c0_129, %c0_130, %c0_131] : memref<9x4x12xf32, #tpu.memory_space<vmem>>, vector<1x4x12xf32>
    %142 = vector.shape_cast %141 : vector<1x4x12xf32> to vector<4x12xf32>
    %cst_132 = arith.constant dense<0.000000e+00> : vector<4x324xf32>
    %143 = tpu.matmul %142, %140, %cst_132 {dimension_numbers = #tpu.dot_dimension_numbers<[1], [0], [0], [1], [0, 0, 1, 1], [], []>} : vector<4x12xf32>, vector<12x324xf32>, vector<4x324xf32> -> vector<4x324xf32>
    %144 = arith.addf %139, %143 : vector<4x324xf32>
    %c0_133 = arith.constant 0 : index
    %c110_134 = arith.constant 110 : index
    %145 = vector.load %arg16[%c0_133, %c110_134] : memref<16x580xf32, #tpu.memory_space<vmem>>, vector<12x324xf32>
    %c1_135 = arith.constant 1 : index
    %c0_136 = arith.constant 0 : index
    %c0_137 = arith.constant 0 : index
    %146 = vector.load %arg4[%c1_135, %c0_136, %c0_137] : memref<9x4x12xf32, #tpu.memory_space<vmem>>, vector<1x4x12xf32>
    %147 = vector.shape_cast %146 : vector<1x4x12xf32> to vector<4x12xf32>
    %cst_138 = arith.constant dense<0.000000e+00> : vector<4x324xf32>
    %148 = tpu.matmul %147, %145, %cst_138 {dimension_numbers = #tpu.dot_dimension_numbers<[1], [0], [0], [1], [0, 0, 1, 1], [], []>} : vector<4x12xf32>, vector<12x324xf32>, vector<4x324xf32> -> vector<4x324xf32>
    %149 = arith.addf %144, %148 : vector<4x324xf32>
    %c0_139 = arith.constant 0 : index
    %c111_140 = arith.constant 111 : index
    %150 = vector.load %arg16[%c0_139, %c111_140] : memref<16x580xf32, #tpu.memory_space<vmem>>, vector<12x324xf32>
    %c2_141 = arith.constant 2 : index
    %c0_142 = arith.constant 0 : index
    %c0_143 = arith.constant 0 : index
    %151 = vector.load %arg4[%c2_141, %c0_142, %c0_143] : memref<9x4x12xf32, #tpu.memory_space<vmem>>, vector<1x4x12xf32>
    %152 = vector.shape_cast %151 : vector<1x4x12xf32> to vector<4x12xf32>
    %cst_144 = arith.constant dense<0.000000e+00> : vector<4x324xf32>
    %153 = tpu.matmul %152, %150, %cst_144 {dimension_numbers = #tpu.dot_dimension_numbers<[1], [0], [0], [1], [0, 0, 1, 1], [], []>} : vector<4x12xf32>, vector<12x324xf32>, vector<4x324xf32> -> vector<4x324xf32>
    %154 = arith.addf %149, %153 : vector<4x324xf32>
    %c0_145 = arith.constant 0 : index
    %c127_146 = arith.constant 127 : index
    %155 = vector.load %arg16[%c0_145, %c127_146] : memref<16x580xf32, #tpu.memory_space<vmem>>, vector<12x324xf32>
    %c3_147 = arith.constant 3 : index
    %c0_148 = arith.constant 0 : index
    %c0_149 = arith.constant 0 : index
    %156 = vector.load %arg4[%c3_147, %c0_148, %c0_149] : memref<9x4x12xf32, #tpu.memory_space<vmem>>, vector<1x4x12xf32>
    %157 = vector.shape_cast %156 : vector<1x4x12xf32> to vector<4x12xf32>
    %cst_150 = arith.constant dense<0.000000e+00> : vector<4x324xf32>
    %158 = tpu.matmul %157, %155, %cst_150 {dimension_numbers = #tpu.dot_dimension_numbers<[1], [0], [0], [1], [0, 0, 1, 1], [], []>} : vector<4x12xf32>, vector<12x324xf32>, vector<4x324xf32> -> vector<4x324xf32>
    %159 = arith.addf %154, %158 : vector<4x324xf32>
    %c0_151 = arith.constant 0 : index
    %c128_152 = arith.constant 128 : index
    %160 = vector.load %arg16[%c0_151, %c128_152] : memref<16x580xf32, #tpu.memory_space<vmem>>, vector<12x324xf32>
    %c4_153 = arith.constant 4 : index
    %c0_154 = arith.constant 0 : index
    %c0_155 = arith.constant 0 : index
    %161 = vector.load %arg4[%c4_153, %c0_154, %c0_155] : memref<9x4x12xf32, #tpu.memory_space<vmem>>, vector<1x4x12xf32>
    %162 = vector.shape_cast %161 : vector<1x4x12xf32> to vector<4x12xf32>
    %cst_156 = arith.constant dense<0.000000e+00> : vector<4x324xf32>
    %163 = tpu.matmul %162, %160, %cst_156 {dimension_numbers = #tpu.dot_dimension_numbers<[1], [0], [0], [1], [0, 0, 1, 1], [], []>} : vector<4x12xf32>, vector<12x324xf32>, vector<4x324xf32> -> vector<4x324xf32>
    %164 = arith.addf %159, %163 : vector<4x324xf32>
    %c0_157 = arith.constant 0 : index
    %c129_158 = arith.constant 129 : index
    %165 = vector.load %arg16[%c0_157, %c129_158] : memref<16x580xf32, #tpu.memory_space<vmem>>, vector<12x324xf32>
    %c5_159 = arith.constant 5 : index
    %c0_160 = arith.constant 0 : index
    %c0_161 = arith.constant 0 : index
    %166 = vector.load %arg4[%c5_159, %c0_160, %c0_161] : memref<9x4x12xf32, #tpu.memory_space<vmem>>, vector<1x4x12xf32>
    %167 = vector.shape_cast %166 : vector<1x4x12xf32> to vector<4x12xf32>
    %cst_162 = arith.constant dense<0.000000e+00> : vector<4x324xf32>
    %168 = tpu.matmul %167, %165, %cst_162 {dimension_numbers = #tpu.dot_dimension_numbers<[1], [0], [0], [1], [0, 0, 1, 1], [], []>} : vector<4x12xf32>, vector<12x324xf32>, vector<4x324xf32> -> vector<4x324xf32>
    %169 = arith.addf %164, %168 : vector<4x324xf32>
    %c0_163 = arith.constant 0 : index
    %c145_164 = arith.constant 145 : index
    %170 = vector.load %arg16[%c0_163, %c145_164] : memref<16x580xf32, #tpu.memory_space<vmem>>, vector<12x324xf32>
    %c6_165 = arith.constant 6 : index
    %c0_166 = arith.constant 0 : index
    %c0_167 = arith.constant 0 : index
    %171 = vector.load %arg4[%c6_165, %c0_166, %c0_167] : memref<9x4x12xf32, #tpu.memory_space<vmem>>, vector<1x4x12xf32>
    %172 = vector.shape_cast %171 : vector<1x4x12xf32> to vector<4x12xf32>
    %cst_168 = arith.constant dense<0.000000e+00> : vector<4x324xf32>
    %173 = tpu.matmul %172, %170, %cst_168 {dimension_numbers = #tpu.dot_dimension_numbers<[1], [0], [0], [1], [0, 0, 1, 1], [], []>} : vector<4x12xf32>, vector<12x324xf32>, vector<4x324xf32> -> vector<4x324xf32>
    %174 = arith.addf %169, %173 : vector<4x324xf32>
    %c0_169 = arith.constant 0 : index
    %c146_170 = arith.constant 146 : index
    %175 = vector.load %arg16[%c0_169, %c146_170] : memref<16x580xf32, #tpu.memory_space<vmem>>, vector<12x324xf32>
    %c7_171 = arith.constant 7 : index
    %c0_172 = arith.constant 0 : index
    %c0_173 = arith.constant 0 : index
    %176 = vector.load %arg4[%c7_171, %c0_172, %c0_173] : memref<9x4x12xf32, #tpu.memory_space<vmem>>, vector<1x4x12xf32>
    %177 = vector.shape_cast %176 : vector<1x4x12xf32> to vector<4x12xf32>
    %cst_174 = arith.constant dense<0.000000e+00> : vector<4x324xf32>
    %178 = tpu.matmul %177, %175, %cst_174 {dimension_numbers = #tpu.dot_dimension_numbers<[1], [0], [0], [1], [0, 0, 1, 1], [], []>} : vector<4x12xf32>, vector<12x324xf32>, vector<4x324xf32> -> vector<4x324xf32>
    %179 = arith.addf %174, %178 : vector<4x324xf32>
    %c0_175 = arith.constant 0 : index
    %c147_176 = arith.constant 147 : index
    %180 = vector.load %arg16[%c0_175, %c147_176] : memref<16x580xf32, #tpu.memory_space<vmem>>, vector<12x324xf32>
    %c8_177 = arith.constant 8 : index
    %c0_178 = arith.constant 0 : index
    %c0_179 = arith.constant 0 : index
    %181 = vector.load %arg4[%c8_177, %c0_178, %c0_179] : memref<9x4x12xf32, #tpu.memory_space<vmem>>, vector<1x4x12xf32>
    %182 = vector.shape_cast %181 : vector<1x4x12xf32> to vector<4x12xf32>
    %cst_180 = arith.constant dense<0.000000e+00> : vector<4x324xf32>
    %183 = tpu.matmul %182, %180, %cst_180 {dimension_numbers = #tpu.dot_dimension_numbers<[1], [0], [0], [1], [0, 0, 1, 1], [], []>} : vector<4x12xf32>, vector<12x324xf32>, vector<4x324xf32> -> vector<4x324xf32>
    %184 = arith.addf %179, %183 : vector<4x324xf32>
    %c0_181 = arith.constant 0 : index
    %c0_182 = arith.constant 0 : index
    %185 = vector.load %arg7[%c0_181, %c0_182] : memref<4x1xf32, #tpu.memory_space<vmem>>, vector<4x1xf32>
    %186 = vector.broadcast %185 : vector<4x1xf32> to vector<4x324xf32>
    %187 = arith.addf %184, %186 : vector<4x324xf32>
    %cst_183 = arith.constant 0.000000e+00 : f32
    %188 = vector.broadcast %cst_183 : f32 to vector<4x324xf32>
    %189 = arith.maximumf %187, %188 : vector<4x324xf32>
    %190 = vector.broadcast %0 : vector<1x324xf32> to vector<4x324xf32>
    %191 = arith.mulf %189, %190 : vector<4x324xf32>
    %c12 = arith.constant 12 : index
    %c128_184 = arith.constant 128 : index
    %192 = vector.load %arg16[%c12, %c128_184] : memref<16x580xf32, #tpu.memory_space<vmem>>, vector<4x324xf32>
    tpu.vector_store %arg16[%c12, %c128_184], %191 {strides = array<i32>} : memref<16x580xf32, #tpu.memory_space<vmem>>, vector<4x324xf32>,
    %193 = vector.extract_strided_slice %8 {offsets = [0, 12], sizes = [2, 4], strides = [1, 1]} : vector<2x16xf32> to vector<2x4xf32>
    %cst_185 = arith.constant dense<0.000000e+00> : vector<4xf32>
    %194 = vector.multi_reduction <add>, %191, %cst_185 [1] : vector<4x324xf32> to vector<4xf32>
    %195 = vector.shape_cast %194 : vector<4xf32> to vector<4x1xf32>
    %cst_186 = arith.constant 3.906250e-03 : f32
    %196 = vector.broadcast %cst_186 : f32 to vector<4x1xf32>
    %197 = arith.mulf %195, %196 : vector<4x1xf32>
    %cst_187 = arith.constant dense<0.000000e+00> : vector<2x1xf32>
    %198 = tpu.matmul %193, %197, %cst_187 {dimension_numbers = #tpu.dot_dimension_numbers<[1], [0], [0], [1], [0, 0, 1, 1], [], []>} : vector<2x4xf32>, vector<4x1xf32>, vector<2x1xf32> -> vector<2x1xf32>
    %199 = arith.addf %138, %198 : vector<2x1xf32>
    %cst_188 = arith.constant 0.000000e+00 : f32
    %200 = vector.broadcast %cst_188 : f32 to vector<2x1xf32>
    %201 = arith.maximumf %199, %200 : vector<2x1xf32>
    %c0_189 = arith.constant 0 : index
    %c0_190 = arith.constant 0 : index
    %202 = vector.load %arg10[%c0_189, %c0_190] : memref<16x2xf32, #tpu.memory_space<vmem>>, vector<16x2xf32>
    %cst_191 = arith.constant dense<0.000000e+00> : vector<16x1xf32>
    %203 = tpu.matmul %202, %201, %cst_191 {dimension_numbers = #tpu.dot_dimension_numbers<[1], [0], [0], [1], [0, 0, 1, 1], [], []>} : vector<16x2xf32>, vector<2x1xf32>, vector<16x1xf32> -> vector<16x1xf32>
    %c0_192 = arith.constant 0 : index
    %c0_193 = arith.constant 0 : index
    %204 = vector.load %arg11[%c0_192, %c0_193] : memref<16x1xf32, #tpu.memory_space<vmem>>, vector<16x1xf32>
    %205 = arith.addf %203, %204 : vector<16x1xf32>
    %cst_194 = arith.constant 0.000000e+00 : f32
    %206 = vector.broadcast %cst_194 : f32 to vector<16x1xf32>
    %207 = arith.subf %206, %205 : vector<16x1xf32>
    %208 = math.exp %207 : vector<16x1xf32>
    %cst_195 = arith.constant 1.000000e+00 : f32
    %209 = vector.broadcast %cst_195 : f32 to vector<16x1xf32>
    %210 = arith.addf %209, %208 : vector<16x1xf32>
    %cst_196 = arith.constant 1.000000e+00 : f32
    %211 = vector.broadcast %cst_196 : f32 to vector<16x1xf32>
    %212 = arith.divf %211, %210 : vector<16x1xf32>
    %c0_197 = arith.constant 0 : index
    %c128_198 = arith.constant 128 : index
    %213 = vector.load %arg16[%c0_197, %c128_198] : memref<16x580xf32, #tpu.memory_space<vmem>>, vector<16x324xf32>
    %214 = vector.broadcast %212 : vector<16x1xf32> to vector<16x324xf32>
    %215 = arith.mulf %213, %214 : vector<16x324xf32>
    %c0_199 = arith.constant 0 : index
    %c0_200 = arith.constant 0 : index
    %216 = vector.load %arg12[%c0_199, %c0_200] : memref<4x16xf32, #tpu.memory_space<vmem>>, vector<4x16xf32>
    %cst_201 = arith.constant dense<0.000000e+00> : vector<4x324xf32>
    %217 = tpu.matmul %216, %215, %cst_201 {dimension_numbers = #tpu.dot_dimension_numbers<[1], [0], [0], [1], [0, 0, 1, 1], [], []>} : vector<4x16xf32>, vector<16x324xf32>, vector<4x324xf32> -> vector<4x324xf32>
    %c0_202 = arith.constant 0 : index
    %c0_203 = arith.constant 0 : index
    %218 = vector.load %arg13[%c0_202, %c0_203] : memref<4x1xf32, #tpu.memory_space<vmem>>, vector<4x1xf32>
    %219 = vector.broadcast %218 : vector<4x1xf32> to vector<4x324xf32>
    %220 = arith.addf %217, %219 : vector<4x324xf32>
    %221 = arith.addf %220, %6 : vector<4x324xf32>
    %c0_204 = arith.constant 0 : index
    %c0_205 = arith.constant 0 : index
    %c0_206 = arith.constant 0 : index
    %222 = vector.load %arg15[%c0_204, %c0_205, %c0_206] : memref<1x4x324xf32, #tpu.memory_space<vmem>>, vector<1x4x324xf32>
    %223 = vector.shape_cast %222 : vector<1x4x324xf32> to vector<4x324xf32>
    %224 = vector.shape_cast %221 : vector<4x324xf32> to vector<1x4x324xf32>
    tpu.vector_store %arg15[%c0_204, %c0_205, %c0_206], %224 {strides = array<i32>} : memref<1x4x324xf32, #tpu.memory_space<vmem>>, vector<1x4x324xf32>,
    return
  }
  func.func @transform_0(%arg0: i32) -> (i32, i32, i32) {
    %c0_i32 = arith.constant 0 : i32
    %c0_i32_0 = arith.constant 0 : i32
    %c0_i32_1 = arith.constant 0 : i32
    return %arg0, %c0_i32, %c0_i32_0 : i32, i32, i32
  }
  func.func @transform_1(%arg0: i32) -> (i32, i32, i32) {
    %c0_i32 = arith.constant 0 : i32
    %c0_i32_0 = arith.constant 0 : i32
    %c0_i32_1 = arith.constant 0 : i32
    %c0_i32_2 = arith.constant 0 : i32
    return %c0_i32, %c0_i32_0, %c0_i32_1 : i32, i32, i32
  }
  func.func @transform_2(%arg0: i32) -> (i32, i32, i32) {
    %c0_i32 = arith.constant 0 : i32
    %c0_i32_0 = arith.constant 0 : i32
    %c0_i32_1 = arith.constant 0 : i32
    %c0_i32_2 = arith.constant 0 : i32
    return %c0_i32, %c0_i32_0, %c0_i32_1 : i32, i32, i32
  }
  func.func @transform_3(%arg0: i32) -> (i32, i32, i32) {
    %c0_i32 = arith.constant 0 : i32
    %c0_i32_0 = arith.constant 0 : i32
    %c0_i32_1 = arith.constant 0 : i32
    %c0_i32_2 = arith.constant 0 : i32
    return %c0_i32, %c0_i32_0, %c0_i32_1 : i32, i32, i32
  }
  func.func @transform_4(%arg0: i32) -> (i32, i32) {
    %c0_i32 = arith.constant 0 : i32
    %c0_i32_0 = arith.constant 0 : i32
    %c0_i32_1 = arith.constant 0 : i32
    return %c0_i32, %c0_i32_0 : i32, i32
  }
  func.func @transform_5(%arg0: i32) -> (i32, i32) {
    %c0_i32 = arith.constant 0 : i32
    %c0_i32_0 = arith.constant 0 : i32
    %c0_i32_1 = arith.constant 0 : i32
    return %c0_i32, %c0_i32_0 : i32, i32
  }
  func.func @transform_6(%arg0: i32) -> (i32, i32) {
    %c0_i32 = arith.constant 0 : i32
    %c0_i32_0 = arith.constant 0 : i32
    %c0_i32_1 = arith.constant 0 : i32
    return %c0_i32, %c0_i32_0 : i32, i32
  }
  func.func @transform_7(%arg0: i32) -> (i32, i32) {
    %c0_i32 = arith.constant 0 : i32
    %c0_i32_0 = arith.constant 0 : i32
    %c0_i32_1 = arith.constant 0 : i32
    return %c0_i32, %c0_i32_0 : i32, i32
  }
  func.func @transform_8(%arg0: i32) -> (i32, i32) {
    %c0_i32 = arith.constant 0 : i32
    %c0_i32_0 = arith.constant 0 : i32
    %c0_i32_1 = arith.constant 0 : i32
    return %c0_i32, %c0_i32_0 : i32, i32
  }
  func.func @transform_9(%arg0: i32) -> (i32, i32) {
    %c0_i32 = arith.constant 0 : i32
    %c0_i32_0 = arith.constant 0 : i32
    %c0_i32_1 = arith.constant 0 : i32
    return %c0_i32, %c0_i32_0 : i32, i32
  }
  func.func @transform_10(%arg0: i32) -> (i32, i32) {
    %c0_i32 = arith.constant 0 : i32
    %c0_i32_0 = arith.constant 0 : i32
    %c0_i32_1 = arith.constant 0 : i32
    return %c0_i32, %c0_i32_0 : i32, i32
  }
  func.func @transform_11(%arg0: i32) -> (i32, i32) {
    %c0_i32 = arith.constant 0 : i32
    %c0_i32_0 = arith.constant 0 : i32
    %c0_i32_1 = arith.constant 0 : i32
    return %c0_i32, %c0_i32_0 : i32, i32
  }
  func.func @transform_12(%arg0: i32) -> (i32, i32) {
    %c0_i32 = arith.constant 0 : i32
    %c0_i32_0 = arith.constant 0 : i32
    %c0_i32_1 = arith.constant 0 : i32
    return %c0_i32, %c0_i32_0 : i32, i32
  }
  func.func @transform_13(%arg0: i32) -> (i32, i32) {
    %c0_i32 = arith.constant 0 : i32
    %c0_i32_0 = arith.constant 0 : i32
    %c0_i32_1 = arith.constant 0 : i32
    return %c0_i32, %c0_i32_0 : i32, i32
  }
  func.func @transform_14(%arg0: i32) -> (i32, i32, i32) {
    %c0_i32 = arith.constant 0 : i32
    %c0_i32_0 = arith.constant 0 : i32
    %c0_i32_1 = arith.constant 0 : i32
    return %arg0, %c0_i32, %c0_i32_0 : i32, i32, i32
  }
}

</mosaic_0001>

<bundles_post_ra>
// kernel: tpu_custom_call.1
= control target key start
LH: loop header
LB: loop body
LE: loop exit
PB: predicated region body
PF: predicated region fallthrough
CT: control target
= control target key end

     0   :  { %s7741_s0 = inlined_call_operand.vmem [shape: f32[2,4,324], index: 0, kind: input, shape index: {}]   ;;  %s7742_s1 = inlined_call_operand.vmem [shape: f32[9,4,4], index: 1, kind: input, shape index: {}]   ;;  %s7743_s2 = inlined_call_operand.vmem [shape: f32[9,4,8], index: 2, kind: input, shape index: {}]   ;;  %s7744_s3 = inlined_call_operand.vmem [shape: f32[9,4,12], index: 3, kind: input, shape index: {}]   ;;  %s7745_s4 = inlined_call_operand.vmem [shape: f32[4,1], index: 4, kind: input, shape index: {}]   ;;  %s7746_s5 = inlined_call_operand.vmem [shape: f32[4,1], index: 5, kind: input, shape index: {}]   ;;  %s7747_s6 = inlined_call_operand.vmem [shape: f32[4,1], index: 6, kind: input, shape index: {}]   ;;  %s7748_s7 = inlined_call_operand.vmem [shape: f32[2,16], index: 7, kind: input, shape index: {}]   ;;  %s7749_s8 = inlined_call_operand.vmem [shape: f32[2,1], index: 8, kind: input, shape index: {}]   ;;  %s7750_s9 = inlined_call_operand.vmem [shape: f32[16,2], index: 9, kind: input, shape index: {}]   ;;  %s7751_s10 = inlined_call_operand.vmem [shape: f32[16,1], index: 10, kind: input, shape index: {}]   ;;  %s7752_s11 = inlined_call_operand.vmem [shape: f32[4,16], index: 11, kind: input, shape index: {}]   ;;  %s7753_s12 = inlined_call_operand.vmem [shape: f32[4,1], index: 12, kind: input, shape index: {}]   ;;  %s7754_s13 = inlined_call_operand.vmem [shape: f32[1,324], index: 13, kind: input, shape index: {}]   ;;  %s7755_s14 = inlined_call_operand.hbm [shape: f32[2,4,324], index: 14, kind: output, shape index: {}]  }
   0x1   :  { %7772 = sst [smem:[#allocation6_spill]] %s7741_s0 }
   0x2   :  { %7773 = sst [smem:[#allocation7_spill]] %s7742_s1 }
   0x3   :  { %7774 = sst [smem:[#allocation8_spill]] %s7745_s4 }
   0x4   :  { %7775 = sst [smem:[#allocation9_spill]] %s7746_s5 }
   0x5   :  { %7776 = sst [smem:[#allocation10_spill]] %s7754_s13 }
   0x6   :  { %19 = vsyncpa [#allocation4], 0 }
   0x7   :  { %21 = vsyncpa [#allocation4 + $0x1], 0  ;;  %s6718_s29 = smov 0   ;;  %s6720_s30 = smov 0  }
   0x8   :  { %s6722_s15 = smov 0   ;;  %s6724_s16 = smov 0  }
   0x9 LB: > { %s6739_s17 = sadd.s32 4294967295, %s6624_s16   ;;  %s5784_s18 = sadd.s32 4294967294, %s6624_s16   ;;  %s6624_s16 = sphi %s6724_s16, %s7797_s16   ;;  %s6620_s15 = sphi %s6722_s15, %s7796_s15   ;;  %s6616_s30 = sphi %s6720_s30, %s7795_s30   ;;  %s6612_s29 = sphi %s6718_s29, %s7794_s29  }
   0xa   : > { %s6743_s19 = sadd.s32 1, %s6624_s16   ;;  %s333_s20 = sadd.s32 1, %s6620_s15 }
   0xb   : > { %s330_s21 = ssub.s32 %s6624_s16, %s6743_s19  ;;  %p343_p0 = scmp.ne.s32.totalorder %s6620_s15, %s6616_s30 }
   0xc   : > { %p331_p1 = scmp.eq.s32.totalorder %s330_s21, 0  ;;  %p344_p2 = scmp.eq.s32.totalorder %s6739_s17, 1 }
   0xd   : > { %p349_p3 = scmp.ne.s32.totalorder %s6616_s30, %s6612_s29  ;;  %p350_p4 = scmp.eq.s32.totalorder %s5784_s18, 1 }
   0xe   : > { %s6754_s22 = scalar_select %p331_p1, %s6620_s15, %s333_s20  }
   0xf   : > { %p6756_p5 = por %p344_p2, %p343_p0  ;;  %p6760_p6 = por %p350_p4, %p349_p3 }
  0x10   : > { %p5787_p7 = scmp.ge.s32.totalorder %s6624_s16, 1  ;;  %p415_p8 = scmp.lt.s32.totalorder %s6624_s16, 3 }
  0x12   : > { %p416_p9 = pnand %p5787_p7, %p415_p8 }
  0x13   : > { %vm469_vm0 = vcmask (!%p416_p9), 1048096   ;;  %v6626_v0 = vmov (!%p416_p9), 0.0   ;;  %p461_p10 = scmp.lt.s32.totalorder (!%p416_p9), %s6739_s17, 1  ;;  %vm482_vm1 = vcmask (!%p416_p9), 551936   ;;  %s7779_s0 = sld [smem:[#allocation6_spill]] (!%p416_p9)  ;;  %vm486_vm2 = vcmask (!%p416_p9), 1043456  }
  0x14   : > { %419 = sbr.rel (%p416_p9) target bundleno = 2341 (0x925), region = 76  ;;  %467 = vst [vmem:[#allocation2] sm:$0xff] (!%p416_p9), %v6626_v0  ;;  %468 = vst [vmem:[#allocation2 + $0x28] sm:$0xff] (!%p416_p9), %v6626_v0  ;;  %669 = vmatprep.mubr.f32.mxu1 (!%p416_p9), %v6626_v0  ;;  %6014 = vmatprep.subr.mxu0 (!%p416_p9), %v6626_v0  ;;  %s7768_s20 = smov (!%p416_p9), 18   ;;  %vm6633_vm3 = vmmov (!%p416_p9), 0   ;;  %v6636_v14 = vmov (!%p416_p9), 0  }
  0x15   : > { %470 = vst.msk [vmem:[#allocation2 + $0x18] sm:$0xff] (!%p416_p9), %vm469_vm0, %v6626_v0  ;;  %473 = vst.msk [vmem:[#allocation2 + $0x40] sm:$0xff] (!%p416_p9), %vm469_vm0, %v6626_v0  ;;  %s7766_s21 = smov (!%p416_p9), 17   ;;  %s7756_s27 = smov (!%p416_p9), 127   ;;  %6016 = vmatprep.mubr.msk.f32.mxu0 (!%p416_p9), %vm6633_vm3, %v6626_v0  ;;  %6409 = vset.pattern.permute.xlu0 (!%p416_p9), %v6636_v14  ;;  %vm592_vm4 = vcmask (!%p416_p9), 146432   ;;  %vm495_vm5 = vcmask (!%p416_p9), 31744  }
  0x16   : > { %s7758_s28 = smov (!%p416_p9), 111   ;;  %s7780_s4 = sld [smem:[#allocation8_spill]] (!%p416_p9)  ;;  %6410 = vset.pattern.permute.xlu1 (!%p416_p9), %v6636_v14  ;;  %vm754_vm6 = vcmask (!%p416_p9), 154624   ;;  %vm918_vm7 = vcmask (!%p416_p9), 138240   ;;  %vm1085_vm8 = vcmask (!%p416_p9), 7168   ;;  %vm1405_vm9 = vcmask (!%p416_p9), 1039360  }
  0x17   : > { %s7782_s1 = sld [smem:[#allocation7_spill]] (!%p416_p9)  ;;  %v6958_v55 = vld [vmem:[%s7748_s7] sm:$0x3] (!%p416_p9)  ;;  %vm1569_vm10 = vcmask (!%p416_p9), 908288   ;;  %vm1733_vm11 = vcmask (!%p416_p9), 900096   ;;  %vm1897_vm12 = vcmask (!%p416_p9), 891904  }
  0x18   : > { %s7783_s13 = sld [smem:[#allocation10_spill]] (!%p416_p9)  ;;  %vm2095_vm13 = vcmask (!%p416_p9), 556036   ;;  %s7790_s5 = sld [smem:[#allocation9_spill]] (!%p416_p9)  ;;  %vm2208_vm14 = vcmask (!%p416_p9), 64512   ;;  %vm6639_vm15 = vmmov (!%p416_p9), 1  }
  0x19   : > { %vm7380_vm0 = vmpackc.low (!%p416_p9), %vm486_vm2, %vm6639_vm15 }
  0x1b   : > { %s462_s25 = scalar_select %p461_p10, %s6739_s17, 1  ;;  %v573_v1 = vld [vmem:[#allocation2] sm:$0xf] }
  0x1c   : > { %584 = vrot.lane.b32.xlu1 %v573_v1, %s7768_s20  ;;  %910 = vrot.lane.b32.xlu0 %v573_v1, %s7766_s21  ;;  %v2053_v13 = vld [vmem:[%s7780_s4] sm:$0xf]  ;;  %s7791_s4 = smov 19  }
  0x1d   : > { %s6352_s26 = smul.u32 12, %s462_s25  ;;  %s7770_s25 = smov 19   ;;  %v6873_v23 = vld [vmem:[%s7782_s1 + $0x4] sm:$0xf]  ;;  %v6896_v31 = vld [vmem:[%s7782_s1] sm:$0xf] }
  0x1e   : > { %v6911_v36 = vld [vmem:[%s7782_s1 + $0x8] sm:$0xf]  ;;  %v6923_v40 = vld [vmem:[%s7782_s1 + $0xc] sm:$0xf]  ;;  %v6938_v44 = vld [vmem:[%s7782_s1 + $0x10] sm:$0xf] }
  0x1f   : > { %s465_s18 = scalar_lea.vmem %s7779_s0, %s6352_s26  ;;  %s7760_s26 = smov 1   ;;  %v6948_v48 = vld [vmem:[%s7782_s1 + $0x14] sm:$0xf]  ;;  %v5826_v60 = vld [vmem:[%s7782_s1 + $0x18] sm:$0xf] }
  0x20   : > { %v6777_v2 = vld [vmem:[%s465_s18] sm:$0xff]  ;;  %v6779_v3 = vld [vmem:[%s465_s18 + $0x8] sm:$0xf]  ;;  %746 = vrot.lane.b32.xlu1 %v573_v1, %s7770_s25  ;;  %s7762_s18 = smov 110   ;;  %s7788_s0 = smov 109  }
  0x21   : > { %480 = vst [vmem:[#allocation2 + $0x8] sm:$0xf] %v6777_v2  ;;  %v6786_v4 = vcombine.high %v6777_v2, %v6777_v2  ;;  %483 = vst.msk [vmem:[#allocation2 + $0x18] sm:$0xf] %vm482_vm1, %v6779_v3  ;;  %v487_v8 = vsel %vm486_vm2, %v6777_v2, 0.0  ;;  %v490_v11 = vsel %vm482_vm1, %v6779_v3, 0.0 }
  0x23   : > { %481 = vst [vmem:[#allocation2 + $0x10] sm:$0xf] %v6786_v4  ;;  %v488_v9 = vsel %vm486_vm2, %v6786_v4, 0.0 }
  0x24   : > { %v489_v10 = vadd.f32 %v488_v9, %v487_v8 }
  0x26   : > { %v491_v12 = vadd.f32 %v490_v11, %v489_v10  ;;  %v5832_v10 = vld [vmem:[%s7782_s1 + $0x1c] sm:$0xf] }
  0x28   : > { %v6792_v5 = vld [vmem:[#allocation2 + $0x8] sm:$0xf]  ;;  %v6813_v7 = vld [vmem:[#allocation2 + $0x18] sm:$0xf] }
  0x29   : > { %586 = vrot.lane.b32.xlu0 %v6792_v5, %s7768_s20  ;;  %748 = vrot.lane.b32.xlu1 %v6792_v5, %s7770_s25 }
  0x2a   : > { %v6798_v6 = vld [vmem:[#allocation2 + $0x10] sm:$0xf] }
  0x2d   : > { %912 = vrot.lane.b32.xlu0 %v6792_v5, %s7766_s21  ;;  %914 = vrot.lane.b32.xlu1 %v6798_v6, %s7766_s21 }
  0x31   : > { %588 = vrot.lane.b32.xlu0 %v6798_v6, %s7768_s20 }
  0x35   : > { %750 = vrot.lane.b32.xlu0 %v6798_v6, %s7770_s25 }
  0x39   : > { %1079 = vrot.lane.b32.xlu0 %v6792_v5, %s7760_s26 }
  0x3d   : > { %1081 = vrot.lane.b32.xlu0 %v6798_v6, %s7760_s26 }
  0x41   : > { %1077 = vrot.lane.b32.xlu0 %v573_v1, %s7760_s26 }
  0x45   : > { %590 = vrot.lane.b32.xlu0 %v6813_v7, %s7768_s20 }
  0x49   : > { %1401 = vrot.lane.b32.xlu0 %v6798_v6, %s7756_s27 }
  0x4d   : > { %1403 = vrot.lane.b32.xlu0 %v6813_v7, %s7756_s27 }
  0x51   : > { %752 = vrot.lane.b32.xlu0 %v6813_v7, %s7770_s25  ;;  %492 = vadd.xlane.f32.xlu1 %v491_v12 }
  0x55   : > { %1399 = vrot.lane.b32.xlu0 %v6792_v5, %s7756_s27  ;;  %s7764_s27 = smov 109  }
  0x59   : > { %916 = vrot.lane.b32.xlu0 %v6813_v7, %s7766_s21 }
  0x5d   : > { %1567 = vrot.lane.b32.xlu0 %v6813_v7, %s7758_s28 }
  0x61   : > { %1083 = vrot.lane.b32.xlu0 %v6813_v7, %s7760_s26  ;;  %s7784_s26 = smov 127  }
  0x62   : > { %1565 = vrot.lane.b32.xlu1 %v6798_v6, %s7758_s28 }
  0x65   : > { %1563 = vrot.lane.b32.xlu0 %v6792_v5, %s7758_s28  ;;  %s7785_s28 = smov 17  }
  0x66   : > { %1731 = vrot.lane.b32.xlu1 %v6813_v7, %s7762_s18 }
  0x69   : > { %1729 = vrot.lane.b32.xlu0 %v6798_v6, %s7762_s18 }
  0x6a   : > { %1893 = vrot.lane.b32.xlu1 %v6798_v6, %s7764_s27 }
  0x6d   : > { %1727 = vrot.lane.b32.xlu0 %v6792_v5, %s7762_s18  ;;  %s7781_s18 = smov 1  }
  0x6e   : > { %1891 = vrot.lane.b32.xlu1 %v6792_v5, %s7764_s27 }
  0x71   : > { %1895 = vrot.lane.b32.xlu0 %v6813_v7, %s7764_s27  ;;  %s7787_s27 = smov 110  }
  0x72   : > { %2513 = vrot.lane.b32.xlu1 %v6626_v0, %s7766_s21  ;;  %s7786_s21 = smov 111  }
  0x75   : > { %2056 = vperm.xlu0 %6409, %v2053_v13  }
  0x79   : > { %2194 = vrot.lane.b32.xlu0 %v6626_v0, %s7768_s20 }
  0x7d   : > { %2353 = vrot.lane.b32.xlu0 %v6626_v0, %s7770_s25 }
  0x81   : > { %2676 = vrot.lane.b32.xlu0 %v6626_v0, %s7781_s18 }
  0x8e   : > { %v585_v15 = vpop.permute.xlu1 %584  ;;  %v911_v16 = vpop.permute.xlu0 %910 }
  0x92   : > { %v747_v17 = vpop.permute.xlu1 %746 }
  0x9b   : > { %v587_v18 = vpop.permute.xlu0 %586  ;;  %v749_v20 = vpop.permute.xlu1 %748 }
  0x9c   : > { %v593_v24 = vsel %vm592_vm4, %v585_v15, %v587_v18  ;;  %v755_v28 = vsel %vm754_vm6, %v747_v17, %v749_v20  ;;  %v5838_v15 = vld [vmem:[%s7782_s1 + $0x20] sm:$0xf] }
  0x9f   : > { %v913_v19 = vpop.permute.xlu0 %912  ;;  %v6878_v25 = vpop.permute.xlu1 %914 }
  0xa0   : > { %v920_v29 = vsel %vm918_vm7, %v913_v19, %v6878_v25  ;;  %v919_v32 = vsel %vm918_vm7, %v911_v16, %v913_v19 }
  0xa3   : > { %v6866_v21 = vpop.permute.xlu0 %588 }
  0xa4   : > { %v594_v22 = vsel %vm592_vm4, %v587_v18, %v6866_v21 }
  0xa5   : > { %5792 = vmatprep.subr.msk.mxu1 %vm486_vm2, %v594_v22 }
  0xa6   : > { %5793 = vmatpush1.msk.msra.mxu1 %vm486_vm2, %v593_v24 }
  0xa7   : > { %v6880_v26 = vpop.permute.xlu0 %750  ;;  %5794 = vmatmul.mubr.msk.f32.vlgmr.msra.gmra.mrb[0].mxu1 %vm495_vm5, %v6873_v23 }
  0xa8   : > { %v756_v27 = vsel %vm754_vm6, %v749_v20, %v6880_v26  ;;  %831 = vmatprep.mubr.f32.mxu1 %v6626_v0  ;;  %v2066_v20 = vlaneseq }
  0xa9   : > { %5797 = vmatprep.subr.msk.mxu1 %vm486_vm2, %v756_v27 }
  0xaa   : > { %5798 = vmatpush1.msk.msra.mxu1 %vm486_vm2, %v755_v28  ;;  %v2067_v24 = vshrl.u32 %v2066_v20, 7 }
  0xab   : > { %5803 = vmatprep.subr.msk.mxu1 %vm486_vm2, %v920_v29  ;;  %v1080_v30 = vpop.permute.xlu0 %1079  ;;  %v466_v29 = vld [vmem:[%s7783_s13] sm:$0x7] }
  0xac   : > { %v2068_v28 = vsub.s32 0, %v2067_v24 }
  0xaf   : > { %v6899_v33 = vpop.permute.xlu0 %1081  ;;  %5799 = vmatmul.mubr.msk.f32.vlgmr.msra.gmra.mrb[0].mxu1 %vm495_vm5, %v6896_v31 }
  0xb0   : > { %5804 = vmatpush1.msk.msra.mxu1 %vm486_vm2, %v919_v32  ;;  %995 = vmatprep.mubr.f32.mxu1 %v6626_v0  ;;  %v1087_v34 = vsel %vm1085_vm8, %v1080_v30, %v6899_v33 }
  0xb1   : > { %5809 = vmatprep.subr.msk.mxu1 %vm486_vm2, %v1087_v34 }
  0xb3   : > { %v1078_v35 = vpop.permute.xlu0 %1077 }
  0xb4   : > { %v1086_v37 = vsel %vm1085_vm8, %v1078_v35, %v1080_v30  ;;  %v7059_v35 = vrot.slane %v466_v29, %v2068_v28 }
  0xb7   : > { %v591_v38 = vpop.permute.xlu0 %590  ;;  %5805 = vmatmul.mubr.msk.f32.vlgmr.msra.gmra.mrb[0].mxu1 %vm495_vm5, %v6911_v36 }
  0xb8   : > { %5810 = vmatpush1.msk.msra.mxu1 %vm486_vm2, %v1086_v37  ;;  %1162 = vmatprep.mubr.f32.mxu1 %v6626_v0  ;;  %v595_v56 = vsel %vm592_vm4, %v6866_v21, %v591_v38 }
  0xb9   : > { %5815 = vmatprep.subr.msk.mxu1 %vm486_vm2, %v6798_v6 }
  0xbb   : > { %v1402_v39 = vpop.permute.xlu0 %1401 }
  0xbf   : > { %v6925_v41 = vpop.permute.xlu0 %1403  ;;  %5811 = vmatmul.mubr.msk.f32.vlgmr.msra.gmra.mrb[0].mxu1 %vm495_vm5, %v6923_v40 }
  0xc0   : > { %5816 = vmatpush1.msk.msra.mxu1 %vm486_vm2, %v6792_v5  ;;  %1317 = vmatprep.mubr.f32.mxu1 %v6626_v0  ;;  %v1407_v42 = vsel %vm1405_vm9, %v1402_v39, %v6925_v41 }
  0xc1   : > { %5821 = vmatprep.subr.msk.mxu1 %vm486_vm2, %v1407_v42 }
  0xc3   : > { %v753_v43 = vpop.permute.xlu0 %752 }
  0xc4   : > { %v757_v62 = vsel %vm754_vm6, %v6880_v26, %v753_v43 }
  0xc7   : > { %v1400_v45 = vpop.permute.xlu0 %1399  ;;  %5817 = vmatmul.mubr.msk.f32.vlgmr.msra.gmra.mrb[0].mxu1 %vm495_vm5, %v6938_v44 }
  0xc8   : > { %v1406_v46 = vsel %vm1405_vm9, %v1400_v45, %v1402_v39  ;;  %1481 = vmatprep.mubr.f32.mxu1 %v6626_v0 }
  0xc9   : > { %5822 = vmatpush1.msk.msra.mxu1 %vm486_vm2, %v1406_v46 }
  0xcb   : > { %v917_v47 = vpop.permute.xlu0 %916 }
  0xcc   : > { %v921_v8 = vsel %vm918_vm7, %v6878_v25, %v917_v47 }
  0xcf   : > { %v6950_v49 = vpop.permute.xlu0 %1567  ;;  %5823 = vmatmul.mubr.msk.f32.vlgmr.msra.gmra.mrb[0].mxu1 %vm495_vm5, %v6948_v48 }
  0xd0   : > { %1645 = vmatprep.mubr.f32.mxu1 %v6626_v0 }
  0xd3   : > { %v1084_v50 = vpop.permute.xlu0 %1083 }
  0xd4   : > { %v1088_v12 = vsel %vm1085_vm8, %v6899_v33, %v1084_v50 }
  0xd7   : > { %v1564_v51 = vpop.permute.xlu0 %1563 }
  0xdb   : > { %v1730_v52 = vpop.permute.xlu0 %1729 }
  0xde   : > { %v493_v53 = vpop.xlane.xlu1 %492 }
  0xdf   : > { %v494_v54 = vmul.f32 0.00390625, %v493_v53  ;;  %v1728_v61 = vpop.permute.xlu0 %1727 }
  0xe0   : > { %v1734_v1 = vsel %vm1733_vm11, %v1728_v61, %v1730_v52 }
  0xe1   : > { %6015 = vmatpush3.msk.msra.mxu0 %vm486_vm2, %v494_v54 }
  0xe2   : > { %6017 = vmatmul.mubr.msk.f32.vlgmr.msra.gmra.mrb[0].mxu0 %vm495_vm5, %v6958_v55  ;;  %6019 = vmatprep.subr.mxu0 %v6626_v0  ;;  %v1566_v57 = vpop.permute.xlu1 %1565 }
  0xe3   : > { %v1571_v58 = vsel %vm1569_vm10, %v1566_v57, %v6950_v49  ;;  %6020 = vmatpush3.msk.msra.mxu0 %vm486_vm2, %v595_v56  ;;  %v1570_v59 = vsel %vm1569_vm10, %v1564_v51, %v1566_v57  ;;  %6021 = vmatprep.mubr.msk.f32.mxu0 %vm6633_vm3, %v6626_v0  ;;  %v1896_v6 = vpop.permute.xlu0 %1895 }
  0xe4   : > { %5827 = vmatprep.subr.msk.mxu1 %vm486_vm2, %v1571_v58  ;;  %6024 = vmatprep.subr.mxu0 %v6626_v0 }
  0xe5   : > { %5828 = vmatpush1.msk.msra.mxu1 %vm486_vm2, %v1570_v59 }
  0xe6   : > { %6022 = vmatmul.mubr.msk.f32.vlgmr.msra.gmra.mrb[2].mxu0 %vm495_vm5, %v6873_v23  ;;  %5829 = vmatmul.mubr.msk.f32.vlgmr.msra.gmra.mrb[0].mxu1 %vm495_vm5, %v5826_v60  ;;  %v1732_v63 = vpop.permute.xlu1 %1731 }
  0xe7   : > { %6025 = vmatpush3.msk.msra.mxu0 %vm486_vm2, %v757_v62  ;;  %6026 = vmatprep.mubr.msk.f32.mxu0 %vm6633_vm3, %v6626_v0  ;;  %v1735_v5 = vsel %vm1733_vm11, %v1730_v52, %v1732_v63 }
  0xe8   : > { %6029 = vmatprep.subr.mxu0 %v6626_v0  ;;  %5833 = vmatprep.subr.msk.mxu1 %vm486_vm2, %v1735_v5 }
  0xe9   : > { %5834 = vmatpush1.msk.msra.mxu1 %vm486_vm2, %v1734_v1  ;;  %1809 = vmatprep.mubr.f32.mxu1 %v6626_v0 }
  0xea   : > { %6027 = vmatmul.mubr.msk.f32.vlgmr.msra.gmra.mrb[4].mxu0 %vm495_vm5, %v6896_v31  ;;  %v1894_v9 = vpop.permute.xlu1 %1893  ;;  %v2072_v31 = vsub.s32 1, %v2067_v24 }
  0xeb   : > { %6030 = vmatpush3.msk.msra.mxu0 %vm486_vm2, %v921_v8  ;;  %6031 = vmatprep.mubr.msk.f32.mxu0 %vm6633_vm3, %v6626_v0  ;;  %v1899_v11 = vsel %vm1897_vm12, %v1894_v9, %v1896_v6 }
  0xec   : > { %6034 = vmatprep.subr.mxu0 %v6626_v0  ;;  %5839 = vmatprep.subr.msk.mxu1 %vm486_vm2, %v1899_v11 }
  0xee   : > { %6032 = vmatmul.mubr.msk.f32.vlgmr.msra.gmra.mrb[6].mxu0 %vm495_vm5, %v6911_v36  ;;  %5835 = vmatmul.mubr.msk.f32.vlgmr.msra.gmra.mrb[0].mxu1 %vm495_vm5, %v5832_v10  ;;  %v1892_v13 = vpop.permute.xlu1 %1891 }
  0xef   : > { %6035 = vmatpush3.msk.msra.mxu0 %vm486_vm2, %v1088_v12  ;;  %6036 = vmatprep.mubr.msk.f32.mxu0 %vm6633_vm3, %v6626_v0  ;;  %v1898_v14 = vsel %vm1897_vm12, %v1892_v13, %v1894_v9 }
  0xf0   : > { %6039 = vmatprep.subr.mxu0 %v6626_v0  ;;  %5840 = vmatpush1.msk.msra.mxu1 %vm486_vm2, %v1898_v14 }
  0xf1   : > { %1973 = vmatprep.mubr.f32.mxu1 %v6626_v0 }
  0xf2   : > { %6037 = vmatmul.mubr.msk.f32.vlgmr.msra.gmra.mrb[8].mxu0 %vm495_vm5, %v6923_v40  ;;  %v7061_v40 = vrot.slane %v466_v29, %v2072_v31  ;;  %v2514_v20 = vpop.permute.xlu1 %2513  ;;  %v5846_v31 = vld [vmem:[%s7743_s2 + $0x4] sm:$0xf] }
  0xf3   : > { %6040 = vmatpush3.msk.msra.mxu0 %vm486_vm2, %v6813_v7  ;;  %6041 = vmatprep.mubr.msk.f32.mxu0 %vm6633_vm3, %v6626_v0 }
  0xf4   : > { %6044 = vmatprep.subr.mxu0 %v6626_v0  ;;  %v2057_v30 = vpop.permute.xlu0 %2056 }
  0xf6   : > { %6042 = vmatmul.mubr.msk.f32.vlgmr.msra.gmra.mrb[10].mxu0 %vm495_vm5, %v6938_v44  ;;  %5841 = vmatmul.mubr.msk.f32.vlgmr.msra.gmra.mrb[0].mxu1 %vm495_vm5, %v5838_v15 }
  0xf7   : > { %6045 = vmatpush3.msk.msra.mxu0 %vm486_vm2, %v6925_v41  ;;  %6046 = vmatprep.mubr.msk.f32.mxu0 %vm6633_vm3, %v6626_v0 }
  0xf8   : > { %6049 = vmatprep.subr.mxu0 %v6626_v0  ;;  %2276 = vmatprep.mubr.f32.mxu1 %v6626_v0 }
  0xfa   : > { %6047 = vmatmul.mubr.msk.f32.vlgmr.msra.gmra.mrb[12].mxu0 %vm495_vm5, %v6948_v48 }
  0xfb   : > { %6050 = vmatpush3.msk.msra.mxu0 %vm486_vm2, %v6950_v49  ;;  %6051 = vmatprep.mubr.msk.f32.mxu0 %vm6633_vm3, %v6626_v0 }
  0xfc   : > { %6054 = vmatprep.subr.mxu0 %v6626_v0 }
  0xfe   : > { %6052 = vmatmul.mubr.msk.f32.vlgmr.msra.gmra.mrb[14].mxu0 %vm495_vm5, %v5826_v60  ;;  %v2076_v60 = vsub.s32 2, %v2067_v24 }
  0xff   : > { %6055 = vmatpush3.msk.msra.mxu0 %vm486_vm2, %v1732_v63  ;;  %6056 = vmatprep.mubr.msk.f32.mxu0 %vm6633_vm3, %v6626_v0 }
 0x100   : > { %6059 = vmatprep.subr.mxu0 %v6626_v0  ;;  %v7067_v5 = vrot.slane %v466_v29, %v2076_v60 }
 0x102   : > { %6057 = vmatmul.mubr.msk.f32.vlgmr.msra.gmra.mrb[16].mxu0 %vm495_vm5, %v5832_v10 }
 0x103   : > { %6060 = vmatpush3.msk.msra.mxu0 %vm486_vm2, %v1896_v6  ;;  %6061 = vmatprep.mubr.msk.f32.mxu0 %vm6633_vm3, %v6626_v0 }
 0x104   : > { %6064 = vmatprep.subr.mxu0 %v6626_v0 }
 0x106   : > { %6062 = vmatmul.mubr.msk.f32.vlgmr.msra.gmra.mrb[18].mxu0 %vm495_vm5, %v5838_v15  ;;  %v3734_v15 = vld [vmem:[#allocation2 + $0x28] sm:$0xf] }
 0x107   : > { %6066 = vmatprep.mubr.msk.f32.mxu0 %vm6633_vm3, %v6626_v0 }
 0x1b9   : > { %v742_v7 = vpop.f32.mrb[2].mxu0 }
 0x1ba   : > { %v6023_v16 = vpop.f32.mrb[3].mxu0 }
 0x1bd   : > { %v904_v17 = vpop.f32.mrb[4].mxu0 }
 0x1be   : > { %v905_v18 = vadd.f32 %v904_v17, %v742_v7  ;;  %v6028_v19 = vpop.f32.mrb[5].mxu0  ;;  %v7126_v7 = vpack.i.bf16 %v3734_v15, %v6626_v0  ;;  %v3626_v17 = vld [vmem:[%s7790_s5] sm:$0xf]  ;;  %s6638_s5 = smov 120  }
 0x1c1   : > { %v1068_v21 = vpop.f32.mrb[6].mxu0 }
 0x1c2   : > { %v1074_v22 = vadd.f32 %v1068_v21, %v905_v18  ;;  %v6033_v23 = vpop.f32.mrb[7].mxu0  ;;  %v2195_v18 = vpop.permute.xlu0 %2194 }
 0x1c5   : > { %v1235_v25 = vpop.f32.mrb[8].mxu0 }
 0x1c6   : > { %v1241_v26 = vadd.f32 %v1235_v25, %v1074_v22  ;;  %v6038_v27 = vpop.f32.mrb[9].mxu0  ;;  %v2354_v19 = vpop.permute.xlu0 %2353 }
 0x1c9   : > { %v1390_v32 = vpop.f32.mrb[10].mxu0  ;;  %v1975_v33 = vpop.f32.mrb[0].mxu1 }
 0x1ca   : > { %v1396_v34 = vadd.f32 %v1390_v32, %v1241_v26  ;;  %v2059_v36 = vadd.f32 %v2057_v30, %v1975_v33  ;;  %v6043_v37 = vpop.f32.mrb[11].mxu0  ;;  %v1977_v38 = vpop.f32.mrb[1].mxu1 }
 0x1cb   : > { %v2060_v39 = vadd.f32 %v2057_v30, %v1977_v38  ;;  %v2677_v21 = vpop.permute.xlu0 %2676 }
 0x1cc   : > { %v2062_v41 = vmax.f32 %v2059_v36, 0.0 }
 0x1cd   : > { %v2063_v42 = vmax.f32 %v2060_v39, 0.0  ;;  %v1554_v43 = vpop.f32.mrb[12].mxu0 }
 0x1ce   : > { %v2081_v44 = vmul.f32 %v7059_v35, %v2062_v41  ;;  %v1560_v45 = vadd.f32 %v1554_v43, %v1396_v34  ;;  %v6048_v46 = vpop.f32.mrb[13].mxu0 }
 0x1cf   : > { %v2082_v47 = vmul.f32 %v7061_v40, %v2063_v42  ;;  %v7177_v42 = vld [vmem:[%s7743_s2] sm:$0xf] }
 0x1d0   : > { %v2087_v48 = vrot.slane %v2081_v44, 4  ;;  %v2097_v49 = vsel %vm486_vm2, %v2081_v44, 0.0 }
 0x1d1   : > { %v2088_v50 = vrot.slane %v2082_v47, 4  ;;  %v1718_v51 = vpop.f32.mrb[14].mxu0  ;;  %v2098_v52 = vsel %vm486_vm2, %v2082_v47, 0.0 }
 0x1d2   : > { %2093 = vst [vmem:[#allocation2 + $0x8] sm:$0xf0] %v2087_v48  ;;  %v1724_v53 = vadd.f32 %v1718_v51, %v1560_v45  ;;  %v6053_v54 = vpop.f32.mrb[15].mxu0  ;;  %v2099_v56 = vadd.f32 %v2098_v52, %v2097_v49  ;;  %v7192_v48 = vld [vmem:[%s7743_s2 + $0x8] sm:$0xf] }
 0x1d3   : > { %2094 = vst [vmem:[#allocation2 + $0x10] sm:$0xf0] %v2088_v50  ;;  %v7202_v52 = vld [vmem:[%s7743_s2 + $0xc] sm:$0xf] }
 0x1d5   : > { %v1882_v57 = vpop.f32.mrb[16].mxu0 }
 0x1d6   : > { %v1888_v58 = vadd.f32 %v1882_v57, %v1724_v53  ;;  %v6058_v59 = vpop.f32.mrb[17].mxu0 }
 0x1d9   : > { %v2046_v61 = vpop.f32.mrb[18].mxu0  ;;  %v7078_v13 = vld [vmem:[#allocation2 + $0x8] sm:$0xff] }
 0x1da   : > { %v2052_v62 = vadd.f32 %v2046_v61, %v1888_v58  ;;  %v6063_v63 = vpop.f32.mrb[19].mxu0  ;;  %v7088_v14 = vld [vmem:[#allocation2 + $0x10] sm:$0xff] }
 0x1db   : > { %v7134_v16 = vpack.i.bf16 %v7088_v14, %v7078_v13  ;;  %v5857_v58 = vld [vmem:[%s7743_s2 + $0x10] sm:$0xf]  ;;  %v5860_v63 = vld [vmem:[%s7743_s2 + $0x14] sm:$0xf] }
 0x1dc   : > { %v2061_v1 = vadd.f32 %v2057_v30, %v2052_v62 }
 0x1de   : > { %v2064_v6 = vmax.f32 %v2061_v1, 0.0 }
 0x1e0   : > { %v2083_v8 = vmul.f32 %v7067_v5, %v2064_v6 }
 0x1e2   : > { %v2089_v9 = vrot.slane %v2083_v8, 4  ;;  %v2100_v10 = vsel %vm482_vm1, %v2083_v8, 0.0 }
 0x1e3   : > { %v2101_v11 = vadd.f32 %v2100_v10, %v2099_v56 }
 0x1e4   : > { %2096 = vst.msk [vmem:[#allocation2 + $0x18] sm:$0xf0] %vm2095_vm13, %v2089_v9  ;;  %v5863_v9 = vld [vmem:[%s7743_s2 + $0x18] sm:$0xf] }
 0x1eb   : > { %v7072_v12 = vld [vmem:[#allocation2 + $0x18] sm:$0xff] }
 0x1ec   : > { %2992 = vrot.lane.b32.xlu0 %v7072_v12, %s7784_s26  ;;  %2200 = vrot.lane.b32.xlu1 %v7072_v12, %s7768_s20 }
 0x1f0   : > { %2355 = vrot.lane.b32.xlu0 %v7078_v13, %s7770_s25  ;;  %2196 = vrot.lane.b32.xlu1 %v7078_v13, %s7768_s20 }
 0x1f4   : > { %2678 = vrot.lane.b32.xlu0 %v7078_v13, %s7781_s18  ;;  %2515 = vrot.lane.b32.xlu1 %v7078_v13, %s7785_s28 }
 0x1f8   : > { %2517 = vrot.lane.b32.xlu0 %v7088_v14, %s7785_s28  ;;  %2198 = vrot.lane.b32.xlu1 %v7088_v14, %s7768_s20  ;;  %s6637_s20 = smov 124  }
 0x1fc   : > { %2988 = vrot.lane.b32.xlu0 %v7078_v13, %s7784_s26  ;;  %2357 = vrot.lane.b32.xlu1 %v7088_v14, %s7770_s25 }
 0x200   : > { %3152 = vrot.lane.b32.xlu0 %v7072_v12, %s7786_s21  ;;  %2680 = vrot.lane.b32.xlu1 %v7088_v14, %s7781_s18 }
 0x204   : > { %3148 = vrot.lane.b32.xlu0 %v7078_v13, %s7786_s21  ;;  %2990 = vrot.lane.b32.xlu1 %v7088_v14, %s7784_s26 }
 0x208   : > { %3312 = vrot.lane.b32.xlu0 %v7072_v12, %s7787_s27 }
 0x20c   : > { %3308 = vrot.lane.b32.xlu0 %v7078_v13, %s7787_s27 }
 0x210   : > { %2105 = vrot.lane.b32.xlu0 %v6958_v55, %s6637_s20  ;;  %s7789_s20 = smov 18  }
 0x214   : > { %2359 = vrot.lane.b32.xlu0 %v7072_v12, %s7770_s25  ;;  %s6641_s25 = smov 116  }
 0x218   : > { %3150 = vrot.lane.b32.xlu0 %v7088_v14, %s7786_s21 }
 0x21c   : > { %3472 = vrot.lane.b32.xlu0 %v7072_v12, %s7788_s0 }
 0x220   : > { %3310 = vrot.lane.b32.xlu0 %v7088_v14, %s7787_s27 }
 0x224   : > { %3468 = vrot.lane.b32.xlu0 %v7078_v13, %s7788_s0 }
 0x228   : > { %3470 = vrot.lane.b32.xlu0 %v7088_v14, %s7788_s0  ;;  %2102 = vadd.xlane.f32.xlu1 %v2101_v11 }
 0x22c   : > { %2682 = vrot.lane.b32.xlu0 %v7072_v12, %s7781_s18 }
 0x230   : > { %6412 = vrot.lane.b32.xlu0 %v7126_v7, %s7789_s20 }
 0x234   : > { %6422 = vrot.lane.b32.xlu0 %v7126_v7, %s7785_s28 }
 0x238   : > { %6427 = vrot.lane.b32.xlu0 %v7134_v16, %s7789_s20 }
 0x239   : > { %2519 = vrot.lane.b32.xlu1 %v7072_v12, %s7785_s28 }
 0x23c   : > { %6437 = vrot.lane.b32.xlu0 %v7134_v16, %s7785_s28 }
 0x23d   : > { %3629 = vperm.xlu1 %6410, %v3626_v17   ;;  %v5866_v17 = vld [vmem:[%s7743_s2 + $0x1c] sm:$0xf] }
 0x241   : > { %6417 = vrot.lane.b32.xlu1 %v7126_v7, %s7791_s4 }
 0x245   : > { %6432 = vrot.lane.b32.xlu1 %v7134_v16, %s7791_s4 }
 0x25e   : > { %v2201_v22 = vpop.permute.xlu1 %2200  ;;  %v7149_v23 = vpop.permute.xlu0 %2992 }
 0x262   : > { %v2197_v24 = vpop.permute.xlu1 %2196  ;;  %v2356_v25 = vpop.permute.xlu0 %2355 }
 0x263   : > { %v2202_v32 = vsel %vm592_vm4, %v2195_v18, %v2197_v24  ;;  %v2361_v38 = vsel %vm754_vm6, %v2354_v19, %v2356_v25  ;;  %v5869_v19 = vld [vmem:[%s7743_s2 + $0x20] sm:$0xf] }
 0x266   : > { %v2516_v26 = vpop.permute.xlu1 %2515  ;;  %v2679_v27 = vpop.permute.xlu0 %2678 }
 0x267   : > { %v2521_v44 = vsel %vm918_vm7, %v2514_v20, %v2516_v26  ;;  %v2684_v49 = vsel %vm1085_vm8, %v2677_v21, %v2679_v27 }
 0x26a   : > { %v2199_v28 = vpop.permute.xlu1 %2198  ;;  %v7151_v29 = vpop.permute.xlu0 %2517 }
 0x26b   : > { %v2203_v30 = vsel %vm592_vm4, %v2197_v24, %v2199_v28  ;;  %v2204_v33 = vsel %vm592_vm4, %v2199_v28, %v2201_v22  ;;  %v2522_v41 = vsel %vm918_vm7, %v2516_v26, %v7151_v29 }
 0x26c   : > { %2212 = vmatprep.subr.mxu1 %v2203_v30 }
 0x26d   : > { %2213 = vmatpush1.msra.mxu1 %v2202_v32 }
 0x26e   : > { %v7159_v34 = vpop.permute.xlu1 %2357  ;;  %5847 = vmatmul.mubr.msk.f32.vlgmr.msra.gmra.mrb[2].mxu1 %vm2208_vm14, %v5846_v31  ;;  %6069 = vmatprep.subr.mxu1 %v6626_v0  ;;  %v2989_v36 = vpop.permute.xlu0 %2988 }
 0x26f   : > { %6070 = vmatpush3.msra.mxu1 %v2204_v33  ;;  %v2362_v37 = vsel %vm754_vm6, %v2356_v25, %v7159_v34  ;;  %6071 = vmatprep.mubr.msk.f32.mxu1 %vm6633_vm3, %v6626_v0 }
 0x270   : > { %2370 = vmatprep.subr.mxu1 %v2362_v37 }
 0x272   : > { %6072 = vmatmul.mubr.msk.f32.vlgmr.msra.gmra.mrb[4].mxu1 %vm2208_vm14, %v5846_v31  ;;  %v7169_v39 = vpop.permute.xlu0 %3152  ;;  %v7179_v43 = vpop.permute.xlu1 %2680 }
 0x273   : > { %2371 = vmatpush1.msra.mxu1 %v2361_v38  ;;  %2434 = vmatprep.mubr.f32.mxu1 %v6626_v0  ;;  %v2685_v46 = vsel %vm1085_vm8, %v2679_v27, %v7179_v43 }
 0x274   : > { %2530 = vmatprep.subr.mxu1 %v2522_v41 }
 0x276   : > { %5849 = vmatmul.mubr.msk.f32.vlgmr.msra.gmra.mrb[2].mxu1 %vm2208_vm14, %v7177_v42  ;;  %v3149_v45 = vpop.permute.xlu0 %3148  ;;  %v2991_v53 = vpop.permute.xlu1 %2990 }
 0x277   : > { %2531 = vmatpush1.msra.mxu1 %v2521_v44  ;;  %2594 = vmatprep.mubr.f32.mxu1 %v6626_v0  ;;  %v2995_v56 = vsel %vm1405_vm9, %v2991_v53, %v7149_v23  ;;  %v2994_v59 = vsel %vm1405_vm9, %v2989_v36, %v2991_v53 }
 0x278   : > { %2693 = vmatprep.subr.mxu1 %v2685_v46 }
 0x27a   : > { %v7187_v47 = vpop.permute.xlu0 %3312 }
 0x27e   : > { %5852 = vmatmul.mubr.msk.f32.vlgmr.msra.gmra.mrb[2].mxu1 %vm2208_vm14, %v7192_v48  ;;  %v3309_v50 = vpop.permute.xlu0 %3308 }
 0x27f   : > { %2694 = vmatpush1.msra.mxu1 %v2684_v49  ;;  %2757 = vmatprep.mubr.f32.mxu1 %v6626_v0 }
 0x280   : > { %2842 = vmatprep.subr.mxu1 %v7088_v14 }
 0x282   : > { %v2106_v51 = vpop.permute.xlu0 %2105 }
 0x286   : > { %5855 = vmatmul.mubr.msk.f32.vlgmr.msra.gmra.mrb[2].mxu1 %vm2208_vm14, %v7202_v52  ;;  %v2360_v54 = vpop.permute.xlu0 %2359 }
 0x287   : > { %2843 = vmatpush1.msra.mxu1 %v7078_v13  ;;  %2906 = vmatprep.mubr.f32.mxu1 %v6626_v0  ;;  %v2363_v22 = vsel %vm754_vm6, %v7159_v34, %v2360_v54 }
 0x288   : > { %3002 = vmatprep.subr.mxu1 %v2995_v56 }
 0x28a   : > { %v3151_v57 = vpop.permute.xlu0 %3150 }
 0x28b   : > { %v3155_v61 = vsel %vm1569_vm10, %v3151_v57, %v7169_v39  ;;  %v3154_v1 = vsel %vm1569_vm10, %v3149_v45, %v3151_v57 }
 0x28e   : > { %5858 = vmatmul.mubr.msk.f32.vlgmr.msra.gmra.mrb[2].mxu1 %vm2208_vm14, %v5857_v58  ;;  %v7215_v60 = vpop.permute.xlu0 %3472 }
 0x28f   : > { %3003 = vmatpush1.msra.mxu1 %v2994_v59  ;;  %3066 = vmatprep.mubr.f32.mxu1 %v6626_v0 }
 0x290   : > { %3162 = vmatprep.subr.mxu1 %v3155_v61 }
 0x292   : > { %v3311_v62 = vpop.permute.xlu0 %3310 }
 0x293   : > { %v3315_v8 = vsel %vm1733_vm11, %v3311_v62, %v7187_v47  ;;  %v3314_v11 = vsel %vm1733_vm11, %v3309_v50, %v3311_v62 }
 0x296   : > { %5861 = vmatmul.mubr.msk.f32.vlgmr.msra.gmra.mrb[2].mxu1 %vm2208_vm14, %v5860_v63  ;;  %v3469_v6 = vpop.permute.xlu0 %3468 }
 0x297   : > { %3163 = vmatpush1.msra.mxu1 %v3154_v1  ;;  %3226 = vmatprep.mubr.f32.mxu1 %v6626_v0 }
 0x298   : > { %3322 = vmatprep.subr.mxu1 %v3315_v8 }
 0x29a   : > { %v3471_v10 = vpop.permute.xlu0 %3470 }
 0x29b   : > { %v3475_v15 = vsel %vm1897_vm12, %v3471_v10, %v7215_v60  ;;  %v3474_v18 = vsel %vm1897_vm12, %v3469_v6, %v3471_v10 }
 0x29e   : > { %5864 = vmatmul.mubr.msk.f32.vlgmr.msra.gmra.mrb[2].mxu1 %vm2208_vm14, %v5863_v9  ;;  %v2683_v26 = vpop.permute.xlu0 %2682 }
 0x29f   : > { %3323 = vmatpush1.msra.mxu1 %v3314_v11  ;;  %3386 = vmatprep.mubr.f32.mxu1 %v6626_v0  ;;  %v2686_v27 = vsel %vm1085_vm8, %v7179_v43, %v2683_v26 }
 0x2a0   : > { %3482 = vmatprep.subr.mxu1 %v3475_v15 }
 0x2a6   : > { %5867 = vmatmul.mubr.msk.f32.vlgmr.msra.gmra.mrb[2].mxu1 %vm2208_vm14, %v5866_v17 }
 0x2a7   : > { %3483 = vmatpush1.msra.mxu1 %v3474_v18  ;;  %3546 = vmatprep.mubr.f32.mxu1 %v6626_v0 }
 0x2ae   : > { %5870 = vmatmul.mubr.msk.f32.vlgmr.msra.gmra.mrb[2].mxu1 %vm2208_vm14, %v5869_v19 }
 0x2af   : > { %3848 = vmatprep.mubr.f32.mxu1 %v6626_v0 }
 0x2b5   : > { %v2103_v20 = vpop.xlane.xlu1 %2102 }
 0x2b6   : > { %v2104_v21 = vmul.f32 0.00390625, %v2103_v20 }
 0x2b8   : > { %6065 = vmatpush3.msk.msra.mxu0 %vm486_vm2, %v2104_v21  ;;  %v6481_v21 = vpack.i.bf16 %v7072_v12, %v7088_v14 }
 0x2b9   : > { %6074 = vmatprep.subr.mxu0 %v6626_v0  ;;  %6067 = vmatmul.mubr.msk.f32.vlgmr.msra.gmra.mrb[0].mxu0 %vm495_vm5, %v2106_v51  ;;  %v2520_v24 = vpop.permute.xlu1 %2519 }
 0x2ba   : > { %6075 = vmatpush3.msra.mxu0 %v2363_v22  ;;  %6076 = vmatprep.mubr.msk.f32.mxu0 %vm6633_vm3, %v6626_v0  ;;  %v2523_v25 = vsel %vm918_vm7, %v7151_v29, %v2520_v24  ;;  %v5311_v24 = vld [vmem:[%s7747_s6] sm:$0xf] }
 0x2bb   : > { %6079 = vmatprep.subr.mxu0 %v6626_v0 }
 0x2bd   : > { %6077 = vmatmul.mubr.msk.f32.vlgmr.msra.gmra.mrb[20].mxu0 %vm2208_vm14, %v7177_v42  ;;  %v3630_v29 = vpop.permute.xlu1 %3629 }
 0x2be   : > { %6080 = vmatpush3.msra.mxu0 %v2523_v25  ;;  %6081 = vmatprep.mubr.msk.f32.mxu0 %vm6633_vm3, %v6626_v0  ;;  %v6413_v25 = vpop.permute.xlu0 %6412 }
 0x2bf   : > { %6084 = vmatprep.subr.mxu0 %v6626_v0 }
 0x2c1   : > { %6082 = vmatmul.mubr.msk.f32.vlgmr.msra.gmra.mrb[22].mxu0 %vm2208_vm14, %v7192_v48 }
 0x2c2   : > { %6085 = vmatpush3.msra.mxu0 %v2686_v27  ;;  %6086 = vmatprep.mubr.msk.f32.mxu0 %vm6633_vm3, %v6626_v0  ;;  %v6423_v26 = vpop.permute.xlu0 %6422 }
 0x2c3   : > { %6089 = vmatprep.subr.mxu0 %v6626_v0 }
 0x2c5   : > { %6087 = vmatmul.mubr.msk.f32.vlgmr.msra.gmra.mrb[24].mxu0 %vm2208_vm14, %v7202_v52 }
 0x2c6   : > { %6090 = vmatpush3.msra.mxu0 %v7072_v12  ;;  %6091 = vmatprep.mubr.msk.f32.mxu0 %vm6633_vm3, %v6626_v0  ;;  %v7349_v27 = vpop.permute.xlu0 %6427 }
 0x2c7   : > { %6094 = vmatprep.subr.mxu0 %v6626_v0 }
 0x2c9   : > { %6092 = vmatmul.mubr.msk.f32.vlgmr.msra.gmra.mrb[26].mxu0 %vm2208_vm14, %v5857_v58 }
 0x2ca   : > { %6095 = vmatpush3.msra.mxu0 %v7149_v23  ;;  %6096 = vmatprep.mubr.msk.f32.mxu0 %vm6633_vm3, %v6626_v0 }
 0x2cb   : > { %6099 = vmatprep.subr.mxu0 %v6626_v0 }
 0x2cd   : > { %6097 = vmatmul.mubr.msk.f32.vlgmr.msra.gmra.mrb[28].mxu0 %vm2208_vm14, %v5860_v63 }
 0x2ce   : > { %6100 = vmatpush3.msra.mxu0 %v7169_v39  ;;  %6101 = vmatprep.mubr.msk.f32.mxu0 %vm6633_vm3, %v6626_v0 }
 0x2cf   : > { %6104 = vmatprep.subr.mxu0 %v6626_v0 }
 0x2d1   : > { %6102 = vmatmul.mubr.msk.f32.vlgmr.msra.gmra.mrb[30].mxu0 %vm2208_vm14, %v5863_v9 }
 0x2d2   : > { %6105 = vmatpush3.msra.mxu0 %v7187_v47  ;;  %6106 = vmatprep.mubr.msk.f32.mxu0 %vm6633_vm3, %v6626_v0 }
 0x2d3   : > { %6109 = vmatprep.subr.mxu0 %v6626_v0 }
 0x2d5   : > { %6107 = vmatmul.mubr.msk.f32.vlgmr.msra.gmra.mrb[32].mxu0 %vm2208_vm14, %v5866_v17 }
 0x2d6   : > { %6110 = vmatpush3.msra.mxu0 %v7215_v60  ;;  %6111 = vmatprep.mubr.msk.f32.mxu0 %vm6633_vm3, %v6626_v0 }
 0x2d7   : > { %6114 = vmatprep.subr.mxu0 %v6626_v0 }
 0x2d9   : > { %6112 = vmatmul.mubr.msk.f32.vlgmr.msra.gmra.mrb[34].mxu0 %vm2208_vm14, %v5869_v19  ;;  %vm3774_vm14 = vcmask 97280  }
 0x2da   : > { %6116 = vmatprep.mubr.msk.f32.mxu0 %vm6633_vm3, %v6626_v0 }
 0x345   : > { %v2349_v23 = vpop.f32.mrb[4].mxu1 }
 0x346   : > { %v6073_v28 = vpop.f32.mrb[5].mxu1 }
 0x347   : > { %v7351_v28 = vpop.permute.xlu0 %6437 }
 0x381   : > { %v3548_v30 = vpop.f32.mrb[2].mxu1 }
 0x382   : > { %v3632_v31 = vadd.f32 %v3630_v29, %v3548_v30  ;;  %v3550_v32 = vpop.f32.mrb[3].mxu1  ;;  %v6414_v30 = vunpack.i.l.bf16 %v6413_v25 }
 0x383   : > { %v3633_v33 = vadd.f32 %v3630_v29, %v3550_v32  ;;  %v6429_v32 = vunpack.i.l.bf16 %v7349_v27 }
 0x384   : > { %v3635_v34 = vmax.f32 %v3632_v31, 0.0  ;;  %v6430_v31 = vunpack.i.h.bf16 %v7349_v27 }
 0x385   : > { %v3636_v36 = vmax.f32 %v3633_v33, 0.0  ;;  %v6415_v33 = vunpack.i.h.bf16 %v6413_v25 }
 0x386   : > { %v3638_v37 = vmul.f32 %v3635_v34, %v7059_v35 }
 0x387   : > { %v3639_v38 = vmul.f32 %v3636_v36, %v7061_v40 }
 0x388   : > { %3641 = vst [vmem:[#allocation2 + $0x30] sm:$0xf] %v3638_v37  ;;  %v3644_v39 = vsel %vm486_vm2, %v3638_v37, 0.0 }
 0x389   : > { %3642 = vst [vmem:[#allocation2 + $0x38] sm:$0xf] %v3639_v38  ;;  %v3645_v41 = vsel %vm486_vm2, %v3639_v38, 0.0 }
 0x38a   : > { %v3646_v0 = vadd.f32 %v3645_v41, %v3644_v39 }
 0x38f   : > { %v7302_v42 = vld [vmem:[#allocation2 + $0x30] sm:$0xf] }
 0x390   : > { %v2507_v43 = vpop.f32.mrb[20].mxu0  ;;  %v7304_v44 = vld [vmem:[#allocation2 + $0x38] sm:$0xf]  ;;  %v6486_v22 = vpack.i.bf16 %v7302_v42, %v7078_v13 }
 0x391   : > { %v2508_v45 = vadd.f32 %v2507_v43, %v2349_v23  ;;  %v6078_v46 = vpop.f32.mrb[21].mxu0  ;;  %v6446_v47 = vpack.i.bf16 %v7304_v44, %v7302_v42  ;;  %v6418_v23 = vpop.permute.xlu1 %6417 }
 0x392   : > { %v3766_v46 = vsel %vm592_vm4, %v6429_v32, %v6430_v31 }
 0x393   : > { %6447 = vrot.lane.b32.xlu0 %v6446_v47, %s7791_s4  ;;  %6442 = vrot.lane.b32.xlu1 %v6446_v47, %s7789_s20 }
 0x394   : > { %v2667_v48 = vpop.f32.mrb[22].mxu0 }
 0x395   : > { %v2673_v49 = vadd.f32 %v2667_v48, %v2508_v45  ;;  %v6083_v50 = vpop.f32.mrb[23].mxu0  ;;  %v3765_v45 = vsel %vm592_vm4, %v6414_v30, %v6429_v32 }
 0x397   : > { %6457 = vrot.lane.b32.xlu0 %v7134_v16, %s7781_s18  ;;  %6452 = vrot.lane.b32.xlu1 %v6446_v47, %s7785_s28 }
 0x398   : > { %v2830_v51 = vpop.f32.mrb[24].mxu0 }
 0x399   : > { %v2836_v52 = vadd.f32 %v2830_v51, %v2673_v49  ;;  %v6088_v53 = vpop.f32.mrb[25].mxu0  ;;  %v6561_v51 = vld [vmem:[%s7748_s7] sm:$0x3] }
 0x39a   : > { %v6419_v53 = vunpack.i.l.bf16 %v6418_v23 }
 0x39b   : > { %6462 = vrot.lane.b32.xlu0 %v7126_v7, %s7781_s18 }
 0x39c   : > { %v2979_v54 = vpop.f32.mrb[26].mxu0 }
 0x39d   : > { %v2985_v56 = vadd.f32 %v2979_v54, %v2836_v52  ;;  %v6093_v57 = vpop.f32.mrb[27].mxu0  ;;  %v6420_v52 = vunpack.i.h.bf16 %v6418_v23 }
 0x3a0   : > { %v3139_v58 = vpop.f32.mrb[28].mxu0 }
 0x3a1   : > { %v3145_v59 = vadd.f32 %v3139_v58, %v2985_v56  ;;  %v6098_v60 = vpop.f32.mrb[29].mxu0  ;;  %v6439_v58 = vunpack.i.l.bf16 %v7351_v28 }
 0x3a4   : > { %v3299_v61 = vpop.f32.mrb[30].mxu0 }
 0x3a5   : > { %v3305_v62 = vadd.f32 %v3299_v61, %v3145_v59  ;;  %v6103_v63 = vpop.f32.mrb[31].mxu0 }
 0x3a8   : > { %v3459_v1 = vpop.f32.mrb[32].mxu0 }
 0x3a9   : > { %v3465_v6 = vadd.f32 %v3459_v1, %v3305_v62  ;;  %v6108_v16 = vpop.f32.mrb[33].mxu0 }
 0x3ac   : > { %v3619_v8 = vpop.f32.mrb[34].mxu0 }
 0x3ad   : > { %v3625_v9 = vadd.f32 %v3619_v8, %v3465_v6  ;;  %v6113_v10 = vpop.f32.mrb[35].mxu0  ;;  %v7403_v6 = vld [vmem:[%s7744_s3 + $0x4] sm:$0xf] }
 0x3ae   : > { %v6425_v10 = vunpack.i.h.bf16 %v6423_v26 }
 0x3af   : > { %v3634_v11 = vadd.f32 %v3630_v29, %v3625_v9  ;;  %v7353_v29 = vpop.permute.xlu1 %6432 }
 0x3b0   : > { %v6435_v34 = vunpack.i.h.bf16 %v7353_v29  ;;  %v6434_v36 = vunpack.i.l.bf16 %v7353_v29  ;;  %v7498_v29 = vld [vmem:[%s7744_s3 + $0x10] sm:$0xf] }
 0x3b1   : > { %v3637_v15 = vmax.f32 %v3634_v11, 0.0 }
 0x3b2   : > { %v3942_v59 = vsel %vm754_vm6, %v6434_v36, %v6435_v34  ;;  %v3941_v16 = vsel %vm754_vm6, %v6419_v53, %v6434_v36 }
 0x3b3   : > { %v3640_v17 = vmul.f32 %v3637_v15, %v7067_v5  ;;  %v7415_v15 = vld [vmem:[#allocation2] sm:$0xff] }
 0x3b5   : > { %v3647_v7 = vsel %vm482_vm1, %v3640_v17, 0.0  ;;  %3643 = vst.msk [vmem:[#allocation2 + $0x40] sm:$0xf] %vm482_vm1, %v3640_v17  ;;  %v6424_v17 = vunpack.i.l.bf16 %v6423_v26 }
 0x3b6   : > { %v3648_v18 = vadd.f32 %v3647_v7, %v3646_v0 }
 0x3bb   : > { %3649 = vadd.xlane.f32.xlu1 %v3648_v18  ;;  %v7424_v18 = vld [vmem:[%s7744_s3] sm:$0xf] }
 0x3bc   : > { %v7318_v19 = vld [vmem:[#allocation2 + $0x40] sm:$0xf] }
 0x3bd   : > { %v6466_v20 = vpack.i.bf16 %v7318_v19, %v7072_v12 }
 0x3bf   : > { %6467 = vrot.lane.b32.xlu0 %v6466_v20, %s7789_s20 }
 0x3c3   : > { %3652 = vrot.lane.b32.xlu0 %v6958_v55, %s6638_s5  ;;  %v6541_v55 = vpack.i.bf16 %v7318_v19, %v7304_v44 }
 0x3c7   : > { %6472 = vrot.lane.b32.xlu0 %v6466_v20, %s7791_s4 }
 0x3cb   : > { %6477 = vrot.lane.b32.xlu0 %v6446_v47, %s7781_s18  ;;  %v6440_v47 = vunpack.i.h.bf16 %v7351_v28 }
 0x3cc   : > { %6492 = vrot.lane.b32.xlu1 %v6466_v20, %s7785_s28  ;;  %s458_s28 = sand.u32 1, %s6616_s30  }
 0x3cd   : > { %v4119_v8 = vsel %vm918_vm7, %v6439_v58, %v6440_v47 }
 0x3cf   : > { %6482 = vrot.lane.b32.xlu0 %v6481_v21, %s7784_s26 }
 0x3d0   : > { %6522 = vrot.lane.b32.xlu1 %v6481_v21, %s7787_s27 }
 0x3d3   : > { %6487 = vrot.lane.b32.xlu0 %v6486_v22, %s7784_s26 }
 0x3d4   : > { %6532 = vrot.lane.b32.xlu1 %v6486_v22, %s7787_s27 }
 0x3d7   : > { %6497 = vrot.lane.b32.xlu0 %v6466_v20, %s7781_s18  ;;  %v4118_v20 = vsel %vm918_vm7, %v6424_v17, %v6439_v58  ;;  %s6353_s18 = smul.u32 192, %s6739_s17  ;;  %s5711_s17 = scalar_lea.sflag [#allocation4], %s458_s28 }
 0x3d8   : > { %6542 = vrot.lane.b32.xlu1 %v6541_v55, %s7788_s0 }
 0x3d9   : > { %s7699_s13 = scalar_lea.hbm %s7755_s14, %s6353_s18 }
 0x3db   : > { %6502 = vrot.lane.b32.xlu0 %v6541_v55, %s7784_s26 }
 0x3dc   : > { %5314 = vperm.xlu1 %6410, %v5311_v24  }
 0x3df   : > { %6507 = vrot.lane.b32.xlu0 %v6481_v21, %s7786_s21 }
 0x3e0   : > { %5346 = vrot.lane.b32.xlu1 %v6561_v51, %s6641_s25  ;;  %s6642_s25 = smov [#allocation3]  }
 0x3e1   : > { %s6566_s5 = sshll.u32 %s6642_s25, 4  ;;  %s6567_s5 = int_to_ptr.vmem [resolvable:$false] %s6566_s5 }
 0x3e2   : > { %s6568_s4 = scalar_lea.vmem %s6567_s5, 384 }
 0x3e3   : > { %6512 = vrot.lane.b32.xlu0 %v6541_v55, %s7786_s21 }
 0x3e7   : > { %6517 = vrot.lane.b32.xlu0 %v6486_v22, %s7786_s21 }
 0x3eb   : > { %6527 = vrot.lane.b32.xlu0 %v6541_v55, %s7787_s27 }
 0x3ef   : > { %6537 = vrot.lane.b32.xlu0 %v6481_v21, %s7788_s0 }
 0x3f3   : > { %6547 = vrot.lane.b32.xlu0 %v6486_v22, %s7788_s0  ;;  %v7435_v22 = vld [vmem:[%s7744_s3 + $0x8] sm:$0xf]  ;;  %s6351_s0 = smul.u32 12, %s458_s28 }
 0x3f5   : > { %s460_s26 = scalar_lea.vmem [#allocation3], %s6351_s0 }
 0x3f6   : > { %s5725_s21 = sshll.u32 %s460_s26, 4  ;;  %s7701_s21 = int_to_ptr.vmem [resolvable:$true] %s5725_s21 }
 0x3f7   : > { %s6562_s1 = scalar_lea.vmem %s7701_s21, 192  ;;  %p6569_p0 = scmp.lt.s32.totalorder %s7701_s21, %s6567_s5 }
 0x3f8   : > { %p6563_p11 = scmp.ne.s32.totalorder %s7701_s21, %s6562_s1  ;;  %p6570_p1 = scmp.lt.s32.totalorder %s6568_s4, %s6562_s1 }
 0x3fa   : > { %p6564_p12 = pnand %p6563_p11, %p6756_p5  ;;  %p6571_p2 = por %p6570_p1, %p6569_p0 }
 0x3fc   : > { %p6565_p13 = pneg %p6564_p12 }
 0x3fe   : > { %p6572_p3 = pnand %p6571_p2, %p6565_p13 }
 0x405   : > { %v7359_v37 = vpop.permute.xlu1 %6442  ;;  %v7361_v38 = vpop.permute.xlu0 %6447 }
 0x406   : > { %v6445_v39 = vunpack.i.h.bf16 %v7359_v37  ;;  %v6444_v41 = vunpack.i.l.bf16 %v7359_v37  ;;  %v6450_v0 = vunpack.i.h.bf16 %v7361_v38  ;;  %v6449_v43 = vunpack.i.l.bf16 %v7361_v38 }
 0x408   : > { %v3768_v48 = vsel %vm592_vm4, %v6415_v33, %v6444_v41  ;;  %v3769_v49 = vsel %vm592_vm4, %v6444_v41, %v6445_v39  ;;  %v3945_v50 = vsel %vm754_vm6, %v6449_v43, %v6450_v0  ;;  %v3944_v62 = vsel %vm754_vm6, %v6420_v52, %v6449_v43 }
 0x409   : > { %v6199_v54 = vpack.c.bf16 %v3769_v49, %v3766_v46  ;;  %v6202_v56 = vpack.c.bf16 %v3768_v48, %v3765_v45  ;;  %v7384_v57 = vpop.permute.xlu1 %6452  ;;  %v6209_v63 = vpack.c.bf16 %v3945_v50, %v3942_v59  ;;  %v6212_v9 = vpack.c.bf16 %v3944_v62, %v3941_v16  ;;  %v7440_v55 = vpop.permute.xlu0 %6457 }
 0x40a   : > { %v6455_v60 = vunpack.i.h.bf16 %v7384_v57  ;;  %v6454_v61 = vunpack.i.l.bf16 %v7384_v57  ;;  %v6460_v30 = vunpack.i.h.bf16 %v7440_v55  ;;  %v6459_v32 = vunpack.i.l.bf16 %v7440_v55  ;;  %v7554_v55 = vld [vmem:[%s7744_s3 + $0x14] sm:$0xf] }
 0x40b   : > { %6201 = vmatprep.subr.msk.bf16.mxu1 %vm7380_vm0, %v6199_v54  ;;  %v6239_v59 = vpack.c.bf16 %v7304_v44, %v7088_v14 }
 0x40c   : > { %v4122_v1 = vsel %vm918_vm7, %v6454_v61, %v6455_v60  ;;  %6204 = vmatpush1.bf16.msk.msra.mxu1 %vm7380_vm0, %v6202_v56  ;;  %v4121_v7 = vsel %vm918_vm7, %v6425_v10, %v6454_v61  ;;  %v4299_v46 = vsel %vm1085_vm8, %v6459_v32, %v6460_v30  ;;  %v7467_v61 = vld [vmem:[%s7744_s3 + $0xc] sm:$0xf] }
 0x40d   : > { %6211 = vmatprep.subr.msk.bf16.mxu1 %vm7380_vm0, %v6209_v63  ;;  %v6219_v11 = vpack.c.bf16 %v4122_v1, %v4119_v8  ;;  %v6222_v21 = vpack.c.bf16 %v4121_v7, %v4118_v20  ;;  %v6463_v24 = vpop.permute.xlu0 %6462  ;;  %v6242_v1 = vpack.c.bf16 %v7302_v42, %v7078_v13 }
 0x40e   : > { %v6464_v33 = vunpack.i.l.bf16 %v6463_v24  ;;  %v6465_v41 = vunpack.i.h.bf16 %v6463_v24 }
 0x40f   : > { %5877 = vmatmul.mubr.msk.f32.vlgmr.msra.gmra.mrb[6].mxu1 %vm3774_vm14, %v7403_v6 }
 0x410   : > { %6214 = vmatpush1.bf16.msk.msra.mxu1 %vm7380_vm0, %v6212_v9  ;;  %4023 = vmatprep.mubr.f32.mxu1 %v7415_v15  ;;  %v4298_v48 = vsel %vm1085_vm8, %v6464_v33, %v6459_v32 }
 0x411   : > { %6221 = vmatprep.subr.msk.bf16.mxu1 %vm7380_vm0, %v6219_v11  ;;  %v6640_v11 = vmov 0.0|0.0  }
 0x417   : > { %5882 = vmatmul.mubr.msk.f32.vlgmr.msra.gmra.mrb[6].mxu1 %vm3774_vm14, %v7424_v18 }
 0x418   : > { %6224 = vmatpush1.bf16.msk.msra.mxu1 %vm7380_vm0, %v6222_v21  ;;  %4200 = vmatprep.mubr.f32.mxu1 %v7415_v15 }
 0x41f   : > { %5888 = vmatmul.mubr.msk.f32.vlgmr.msra.gmra.mrb[6].mxu1 %vm3774_vm14, %v7435_v22 }
 0x420   : > { %4380 = vmatprep.mubr.f32.mxu1 %v7415_v15 }
 0x431   : > { %v6468_v25 = vpop.permute.xlu0 %6467 }
 0x432   : > { %v6470_v56 = vunpack.i.h.bf16 %v6468_v25  ;;  %v6469_v58 = vunpack.i.l.bf16 %v6468_v25 }
 0x434   : > { %v3770_v14 = vsel %vm592_vm4, %v6445_v39, %v6470_v56  ;;  %v3767_v44 = vsel %vm592_vm4, %v6430_v31, %v6469_v58  ;;  %vm5429_vm4 = vcmask 15360  }
 0x435   : > { %v3653_v26 = vpop.permute.xlu0 %3652  ;;  %v6206_v42 = vpack.c.bf16 %v3770_v14, %v3767_v44 }
 0x439   : > { %v6473_v23 = vpop.permute.xlu0 %6472 }
 0x43a   : > { %v6474_v63 = vunpack.i.l.bf16 %v6473_v23  ;;  %v6475_v16 = vunpack.i.h.bf16 %v6473_v23 }
 0x43c   : > { %v3943_v37 = vsel %vm754_vm6, %v6435_v34, %v6474_v63  ;;  %v3946_v27 = vsel %vm754_vm6, %v6450_v0, %v6475_v16 }
 0x43d   : > { %v7444_v36 = vpop.permute.xlu0 %6477  ;;  %v6216_v7 = vpack.c.bf16 %v3946_v27, %v3943_v37 }
 0x43e   : > { %v6480_v43 = vunpack.i.h.bf16 %v7444_v36  ;;  %v6479_v45 = vunpack.i.l.bf16 %v7444_v36 }
 0x440   : > { %v4301_v49 = vsel %vm1085_vm8, %v6465_v41, %v6479_v45  ;;  %v4302_v50 = vsel %vm1085_vm8, %v6479_v45, %v6480_v43 }
 0x441   : > { %v6229_v52 = vpack.c.bf16 %v4302_v50, %v4299_v46  ;;  %v6232_v53 = vpack.c.bf16 %v4301_v49, %v4298_v48  ;;  %v7456_v54 = vpop.permute.xlu0 %6482 }
 0x442   : > { %v6485_v31 = vunpack.i.h.bf16 %v7456_v54  ;;  %v6484_v39 = vunpack.i.l.bf16 %v7456_v54 }
 0x443   : > { %6231 = vmatprep.subr.msk.bf16.mxu1 %vm7380_vm0, %v6229_v52 }
 0x444   : > { %6234 = vmatpush1.bf16.msk.msra.mxu1 %vm7380_vm0, %v6232_v53  ;;  %v4630_v25 = vsel %vm1405_vm9, %v6484_v39, %v6485_v31 }
 0x445   : > { %v6488_v62 = vpop.permute.xlu0 %6487  ;;  %6241 = vmatprep.subr.msk.bf16.mxu1 %vm7380_vm0, %v6239_v59 }
 0x446   : > { %v6489_v10 = vunpack.i.l.bf16 %v6488_v62  ;;  %v6490_v20 = vunpack.i.h.bf16 %v6488_v62 }
 0x447   : > { %5894 = vmatmul.mubr.msk.f32.vlgmr.msra.gmra.mrb[6].mxu1 %vm3774_vm14, %v7467_v61 }
 0x448   : > { %v3650_v8 = vpop.xlane.xlu1 %3649  ;;  %6244 = vmatpush1.bf16.msk.msra.mxu1 %vm7380_vm0, %v6242_v1  ;;  %4535 = vmatprep.mubr.f32.mxu1 %v7415_v15 }
 0x449   : > { %v3651_v9 = vmul.f32 0.00390625, %v3650_v8  ;;  %v6498_v13 = vpop.permute.xlu0 %6497 }
 0x44a   : > { %v6500_v23 = vunpack.i.h.bf16 %v6498_v13  ;;  %v6499_v32 = vunpack.i.l.bf16 %v6498_v13 }
 0x44b   : > { %6115 = vmatpush3.msk.msra.mxu0 %vm486_vm2, %v3651_v9 }
 0x44c   : > { %6205 = vmatprep.subr.bf16.mxu0 %v6640_v11  ;;  %v6493_v17 = vpop.permute.xlu1 %6492  ;;  %6117 = vmatmul.mubr.msk.f32.vlgmr.msra.gmra.mrb[0].mxu0 %vm495_vm5, %v3653_v26  ;;  %v4629_v26 = vsel %vm1405_vm9, %v6489_v10, %v6484_v39 }
 0x44d   : > { %v6495_v34 = vunpack.i.h.bf16 %v6493_v17  ;;  %v6494_v38 = vunpack.i.l.bf16 %v6493_v17  ;;  %v7500_v0 = vpop.permute.xlu0 %6502  ;;  %6208 = vmatpush3.bf16.msk.msra.mxu0 %vm7380_vm0, %v6206_v42  ;;  %6123 = vmatprep.mubr.msk.f32.mxu0 %vm6633_vm3, %v7415_v15  ;;  %v5909_v17 = vld [vmem:[%s7744_s3 + $0x18] sm:$0xf] }
 0x44e   : > { %v6505_v21 = vunpack.i.h.bf16 %v7500_v0  ;;  %v6504_v24 = vunpack.i.l.bf16 %v7500_v0  ;;  %6215 = vmatprep.subr.bf16.mxu0 %v6640_v11 }
 0x44f   : > { %5900 = vmatmul.mubr.msk.f32.vlgmr.msra.gmra.mrb[6].mxu1 %vm3774_vm14, %v7498_v29  ;;  %v4123_v33 = vsel %vm918_vm7, %v6455_v60, %v6495_v34  ;;  %v4120_v41 = vsel %vm918_vm7, %v6440_v47, %v6494_v38  ;;  %v4300_v47 = vsel %vm1085_vm8, %v6460_v30, %v6499_v32  ;;  %v4303_v60 = vsel %vm1085_vm8, %v6480_v43, %v6500_v23 }
 0x450   : > { %v4631_v45 = vsel %vm1405_vm9, %v6490_v20, %v6504_v24  ;;  %v4632_v46 = vsel %vm1405_vm9, %v6504_v24, %v6505_v21  ;;  %6124 = vmatmul.mubr.msk.f32.vlgmr.msra.gmra.mrb[36].mxu0 %vm3774_vm14, %v7403_v6  ;;  %v7527_v50 = vpop.permute.xlu1 %6522  ;;  %4709 = vmatprep.mubr.f32.mxu1 %v7415_v15  ;;  %v6226_v28 = vpack.c.bf16 %v4123_v33, %v4120_v41 }
 0x451   : > { %v6249_v48 = vpack.c.bf16 %v4632_v46, %v4630_v25  ;;  %v6252_v49 = vpack.c.bf16 %v4631_v45, %v4629_v26  ;;  %v7529_v57 = vpop.permute.xlu0 %6507  ;;  %6218 = vmatpush3.bf16.msk.msra.mxu0 %vm7380_vm0, %v6216_v7  ;;  %6130 = vmatprep.mubr.msk.f32.mxu0 %vm6633_vm3, %v7415_v15  ;;  %v6525_v14 = vunpack.i.h.bf16 %v7527_v50  ;;  %v6524_v44 = vunpack.i.l.bf16 %v7527_v50  ;;  %v5915_v46 = vld [vmem:[%s7744_s3 + $0x1c] sm:$0xf] }
 0x452   : > { %6225 = vmatprep.subr.bf16.mxu0 %v6640_v11  ;;  %v6510_v6 = vunpack.i.h.bf16 %v7529_v57  ;;  %v6509_v52 = vunpack.i.l.bf16 %v7529_v57 }
 0x453   : > { %6251 = vmatprep.subr.msk.bf16.mxu1 %vm7380_vm0, %v6249_v48 }
 0x454   : > { %6131 = vmatmul.mubr.msk.f32.vlgmr.msra.gmra.mrb[38].mxu0 %vm3774_vm14, %v7424_v18  ;;  %6254 = vmatpush1.bf16.msk.msra.mxu1 %vm7380_vm0, %v6252_v49  ;;  %v6236_v18 = vpack.c.bf16 %v4303_v60, %v4300_v47  ;;  %v6533_v53 = vpop.permute.xlu1 %6532  ;;  %v4804_v56 = vsel %vm1569_vm10, %v6509_v52, %v6510_v6 }
 0x455   : > { %v6513_v30 = vpop.permute.xlu0 %6512  ;;  %6228 = vmatpush3.bf16.msk.msra.mxu0 %vm7380_vm0, %v6226_v28  ;;  %6137 = vmatprep.mubr.msk.f32.mxu0 %vm6633_vm3, %v7415_v15  ;;  %v6534_v16 = vunpack.i.l.bf16 %v6533_v53  ;;  %v6535_v27 = vunpack.i.h.bf16 %v6533_v53  ;;  %v5921_v28 = vld [vmem:[%s7744_s3 + $0x20] sm:$0xf] }
 0x456   : > { %v6515_v36 = vunpack.i.h.bf16 %v6513_v30  ;;  %v6514_v43 = vunpack.i.l.bf16 %v6513_v30  ;;  %6235 = vmatprep.subr.bf16.mxu0 %v6640_v11 }
 0x457   : > { %5906 = vmatmul.mubr.msk.f32.vlgmr.msra.gmra.mrb[6].mxu1 %vm3774_vm14, %v7554_v55 }
 0x458   : > { %v4806_v58 = vsel %vm1569_vm10, %v6514_v43, %v6515_v36  ;;  %6138 = vmatmul.mubr.msk.f32.vlgmr.msra.gmra.mrb[40].mxu0 %vm3774_vm14, %v7435_v22  ;;  %4883 = vmatprep.mubr.f32.mxu1 %v7415_v15  ;;  %v6246_v22 = vpack.c.bf16 %v7318_v19, %v7072_v12  ;;  %v6543_v13 = vpop.permute.xlu1 %6542  ;;  %v6256_v12 = vpack.c.bf16 %v6505_v21, %v6485_v31 }
 0x459   : > { %v6259_v59 = vpack.c.bf16 %v4806_v58, %v4804_v56  ;;  %v6518_v62 = vpop.permute.xlu0 %6517  ;;  %6238 = vmatpush3.bf16.msk.msra.mxu0 %vm7380_vm0, %v6236_v18  ;;  %6144 = vmatprep.mubr.msk.f32.mxu0 %vm6633_vm3, %v7415_v15  ;;  %v4978_v19 = vsel %vm1733_vm11, %v6524_v44, %v6525_v14  ;;  %v6545_v34 = vunpack.i.h.bf16 %v6543_v13  ;;  %v6544_v38 = vunpack.i.l.bf16 %v6543_v13 }
 0x45a   : > { %v6520_v63 = vunpack.i.h.bf16 %v6518_v62  ;;  %v6519_v1 = vunpack.i.l.bf16 %v6518_v62  ;;  %6245 = vmatprep.subr.bf16.mxu0 %v6640_v11  ;;  %v6266_v25 = vpack.c.bf16 %v6515_v36, %v6510_v6 }
 0x45b   : > { %6261 = vmatprep.subr.msk.bf16.mxu1 %vm7380_vm0, %v6259_v59 }
 0x45c   : > { %v4803_v8 = vsel %vm1569_vm10, %v6519_v1, %v6509_v52  ;;  %v4805_v9 = vsel %vm1569_vm10, %v6520_v63, %v6514_v43  ;;  %6145 = vmatmul.mubr.msk.f32.vlgmr.msra.gmra.mrb[42].mxu0 %vm3774_vm14, %v7467_v61  ;;  %v4977_v61 = vsel %vm1733_vm11, %v6534_v16, %v6524_v44 }
 0x45d   : > { %v6262_v42 = vpack.c.bf16 %v4805_v9, %v4803_v8  ;;  %v6528_v37 = vpop.permute.xlu0 %6527  ;;  %6248 = vmatpush3.bf16.msk.msra.mxu0 %vm7380_vm0, %v6246_v22  ;;  %6151 = vmatprep.mubr.msk.f32.mxu0 %vm6633_vm3, %v7415_v15 }
 0x45e   : > { %v6530_v39 = vunpack.i.h.bf16 %v6528_v37  ;;  %v6529_v10 = vunpack.i.l.bf16 %v6528_v37  ;;  %6255 = vmatprep.subr.bf16.mxu0 %v6640_v11 }
 0x45f   : > { %6264 = vmatpush1.bf16.msk.msra.mxu1 %vm7380_vm0, %v6262_v42 }
 0x460   : > { %v4979_v7 = vsel %vm1733_vm11, %v6535_v27, %v6529_v10  ;;  %v4980_v54 = vsel %vm1733_vm11, %v6529_v10, %v6530_v39  ;;  %6152 = vmatmul.mubr.msk.f32.vlgmr.msra.gmra.mrb[44].mxu0 %vm3774_vm14, %v7498_v29  ;;  %v5154_v29 = vsel %vm1897_vm12, %v6544_v38, %v6545_v34  ;;  %v6276_v45 = vpack.c.bf16 %v6530_v39, %v6525_v14  ;;  %v5315_v39 = vpop.permute.xlu1 %5314 }
 0x461   : > { %v6269_v31 = vpack.c.bf16 %v4980_v54, %v4978_v19  ;;  %v6272_v0 = vpack.c.bf16 %v4979_v7, %v4977_v61  ;;  %v6538_v20 = vpop.permute.xlu0 %6537  ;;  %6258 = vmatpush3.bf16.msk.msra.mxu0 %vm7380_vm0, %v6256_v12  ;;  %6158 = vmatprep.mubr.msk.f32.mxu0 %vm6633_vm3, %v7415_v15 }
 0x462   : > { %v6540_v21 = vunpack.i.h.bf16 %v6538_v20  ;;  %v6539_v24 = vunpack.i.l.bf16 %v6538_v20  ;;  %5912 = vmatmul.mubr.msk.f32.vlgmr.msra.gmra.mrb[6].mxu1 %vm3774_vm14, %v5909_v17  ;;  %6265 = vmatprep.subr.bf16.mxu0 %v6640_v11 }
 0x463   : > { %6271 = vmatprep.subr.msk.bf16.mxu1 %vm7380_vm0, %v6269_v31  ;;  %5057 = vmatprep.mubr.f32.mxu1 %v7415_v15 }
 0x464   : > { %v5152_v26 = vsel %vm1897_vm12, %v6539_v24, %v6540_v21  ;;  %6159 = vmatmul.mubr.msk.f32.vlgmr.msra.gmra.mrb[46].mxu0 %vm3774_vm14, %v7554_v55  ;;  %6274 = vmatpush1.bf16.msk.msra.mxu1 %vm7380_vm0, %v6272_v0  ;;  %v6286_v57 = vpack.c.bf16 %v6545_v34, %v6540_v21 }
 0x465   : > { %v6279_v23 = vpack.c.bf16 %v5154_v29, %v5152_v26  ;;  %v6548_v32 = vpop.permute.xlu0 %6547  ;;  %6268 = vmatpush3.bf16.msk.msra.mxu0 %vm7380_vm0, %v6266_v25  ;;  %6165 = vmatprep.mubr.msk.f32.mxu0 %vm6633_vm3, %v7415_v15 }
 0x466   : > { %v6550_v33 = vunpack.i.h.bf16 %v6548_v32  ;;  %v6549_v41 = vunpack.i.l.bf16 %v6548_v32  ;;  %6275 = vmatprep.subr.bf16.mxu0 %v6640_v11 }
 0x467   : > { %6281 = vmatprep.subr.msk.bf16.mxu1 %vm7380_vm0, %v6279_v23 }
 0x468   : > { %v5153_v48 = vsel %vm1897_vm12, %v6550_v33, %v6544_v38  ;;  %v5151_v49 = vsel %vm1897_vm12, %v6549_v41, %v6539_v24  ;;  %6166 = vmatmul.mubr.msk.f32.vlgmr.msra.gmra.mrb[48].mxu0 %vm3774_vm14, %v5909_v17  ;;  %v5347_v33 = vpop.permute.xlu1 %5346  ;;  %v485_v41 = vld [vmem:[%s7749_s8] sm:$0x3] }
 0x469   : > { %v6282_v50 = vpack.c.bf16 %v5153_v48, %v5151_v49  ;;  %6278 = vmatpush3.bf16.msk.msra.mxu0 %vm7380_vm0, %v6276_v45  ;;  %6172 = vmatprep.mubr.msk.f32.mxu0 %vm6633_vm3, %v7415_v15 }
 0x46a   : > { %5918 = vmatmul.mubr.msk.f32.vlgmr.msra.gmra.mrb[6].mxu1 %vm3774_vm14, %v5915_v46  ;;  %6285 = vmatprep.subr.bf16.mxu0 %v6640_v11 }
 0x46b   : > { %6284 = vmatpush1.bf16.msk.msra.mxu1 %vm7380_vm0, %v6282_v50  ;;  %5231 = vmatprep.mubr.f32.mxu1 %v7415_v15  ;;  %v5428_v50 = vld [vmem:[%s7751_s10 + $0x8] sm:$0xff] }
 0x46c   : > { %6173 = vmatmul.mubr.msk.f32.vlgmr.msra.gmra.mrb[50].mxu0 %vm3774_vm14, %v5915_v46 }
 0x46d   : > { %6288 = vmatpush3.bf16.msk.msra.mxu0 %vm7380_vm0, %v6286_v57  ;;  %6179 = vmatprep.mubr.msk.f32.mxu0 %vm6633_vm3, %v7415_v15  ;;  %v5427_v57 = vld [vmem:[%s7751_s10] sm:$0xff] }
 0x46e   : > { %6182 = vmatprep.subr.mxu0 %v7415_v15 }
 0x470   : > { %6180 = vmatmul.mubr.msk.f32.vlgmr.msra.gmra.mrb[52].mxu0 %vm3774_vm14, %v5921_v28 }
 0x471   : > { %6184 = vmatprep.mubr.msk.f32.mxu0 %vm6633_vm3, %v7415_v15 }
 0x472   : > { %5924 = vmatmul.mubr.msk.f32.vlgmr.msra.gmra.mrb[6].mxu1 %vm3774_vm14, %v5921_v28 }
 0x523   : > { %v3921_v47 = vpop.f32.mrb[36].mxu0 }
 0x524   : > { %v6125_v60 = vpop.f32.mrb[37].mxu0 }
 0x527   : > { %v4096_v6 = vpop.f32.mrb[38].mxu0 }
 0x528   : > { %v4097_v52 = vadd.f32 %v4096_v6, %v3921_v47  ;;  %v6132_v55 = vpop.f32.mrb[39].mxu0 }
 0x52b   : > { %v4273_v30 = vpop.f32.mrb[40].mxu0 }
 0x52c   : > { %v4279_v36 = vadd.f32 %v4273_v30, %v4097_v52  ;;  %v6139_v43 = vpop.f32.mrb[41].mxu0 }
 0x52f   : > { %v4453_v18 = vpop.f32.mrb[42].mxu0 }
 0x530   : > { %v4459_v53 = vadd.f32 %v4453_v18, %v4279_v36  ;;  %v6146_v56 = vpop.f32.mrb[43].mxu0 }
 0x533   : > { %v4608_v58 = vpop.f32.mrb[44].mxu0 }
 0x534   : > { %v4614_v59 = vadd.f32 %v4608_v58, %v4459_v53  ;;  %v6153_v62 = vpop.f32.mrb[45].mxu0  ;;  %v5550_v58 = vld [vmem:[%s7753_s12] sm:$0xf] }
 0x535   : > { %v5527_v62 = vld [vmem:[#allocation2 + $0x8] sm:$0xff] }
 0x537   : > { %v4782_v63 = vpop.f32.mrb[46].mxu0 }
 0x538   : > { %v4788_v1 = vadd.f32 %v4782_v63, %v4614_v59  ;;  %v6160_v14 = vpop.f32.mrb[47].mxu0  ;;  %v5528_v63 = vld [vmem:[#allocation2 + $0x10] sm:$0xff] }
 0x53b   : > { %v4956_v44 = vpop.f32.mrb[48].mxu0 }
 0x53c   : > { %v4962_v16 = vadd.f32 %v4956_v44, %v4788_v1  ;;  %v6167_v22 = vpop.f32.mrb[49].mxu0  ;;  %v5529_v1 = vld [vmem:[#allocation2 + $0x18] sm:$0xff] }
 0x53f   : > { %v5130_v8 = vpop.f32.mrb[50].mxu0 }
 0x540   : > { %v5136_v9 = vadd.f32 %v5130_v8, %v4962_v16  ;;  %v6174_v13 = vpop.f32.mrb[51].mxu0 }
 0x543   : > { %v5304_v42 = vpop.f32.mrb[52].mxu0 }
 0x544   : > { %v5310_v37 = vadd.f32 %v5304_v42, %v5136_v9  ;;  %v6181_v27 = vpop.f32.mrb[53].mxu0 }
 0x545   : > { %v5233_v10 = vpop.f32.mrb[6].mxu1 }
 0x546   : > { %v5319_v12 = vadd.f32 %v5315_v39, %v5310_v37  ;;  %v5317_v19 = vadd.f32 %v5315_v39, %v5233_v10  ;;  %v5235_v61 = vpop.f32.mrb[7].mxu1 }
 0x547   : > { %v5318_v17 = vadd.f32 %v5315_v39, %v5235_v61 }
 0x548   : > { %v5322_v34 = vmax.f32 %v5319_v12, 0.0  ;;  %v5320_v38 = vmax.f32 %v5317_v19, 0.0  ;;  %v5549_v19 = vld [vmem:[%s7752_s11] sm:$0xf] }
 0x549   : > { %v5321_v7 = vmax.f32 %v5318_v17, 0.0 }
 0x54a   : > { %v5325_v54 = vmul.f32 %v5322_v34, %v7067_v5  ;;  %v5323_v31 = vmul.f32 %v5320_v38, %v7059_v35 }
 0x54b   : > { %v5324_v0 = vmul.f32 %v5321_v7, %v7061_v40  ;;  %v5425_v40 = vld [vmem:[%s7750_s9] sm:$0xff] }
 0x54c   : > { %v5331_v20 = vrot.slane %v5325_v54, 4  ;;  %v5329_v21 = vrot.slane %v5323_v31, 4  ;;  %v5338_v24 = vsel %vm486_vm2, %v5323_v31, 0.0  ;;  %v5341_v23 = vsel %vm482_vm1, %v5325_v54, 0.0  ;;  %6189 = vmatprep.mubr.msk.f32.mxu1 %vm5429_vm4, %v5425_v40 }
 0x54d   : > { %v5330_v25 = vrot.slane %v5324_v0, 4  ;;  %v5339_v29 = vsel %vm486_vm2, %v5324_v0, 0.0 }
 0x54e   : > { %5337 = vst.msk [vmem:[#allocation2 + $0x40] sm:$0xf0] %vm2095_vm13, %v5331_v20  ;;  %5335 = vst [vmem:[#allocation2 + $0x30] sm:$0xf0] %v5329_v21  ;;  %v5340_v26 = vadd.f32 %v5339_v29, %v5338_v24 }
 0x54f   : > { %5336 = vst [vmem:[#allocation2 + $0x38] sm:$0xf0] %v5330_v25 }
 0x550   : > { %v5342_v32 = vadd.f32 %v5341_v23, %v5340_v26 }
 0x552   : > { %5343 = vadd.xlane.f32.xlu0 %v5342_v32 }
 0x555   : > { %v5530_v16 = vld [vmem:[#allocation2 + $0x30] sm:$0xff]  ;;  %v5532_v22 = vld [vmem:[#allocation2 + $0x40] sm:$0xff] }
 0x556   : > { %v5531_v9 = vld [vmem:[#allocation2 + $0x38] sm:$0xff] }
 0x5df   : > { %v5344_v5 = vpop.xlane.xlu0 %5343 }
 0x5e0   : > { %v5345_v35 = vmul.f32 0.00390625, %v5344_v5 }
 0x5e2   : > { %6183 = vmatpush3.msk.msra.mxu0 %vm486_vm2, %v5345_v35  ;;  %vm5436_vm2 = vcmask 1041408  }
 0x5e3   : > { %6185 = vmatmul.mubr.msk.f32.vlgmr.msra.gmra.mrb[0].mxu0 %vm495_vm5, %v5347_v33  ;;  %6293 = vmatprep.subr.bf16.mxu0 %v6640_v11  ;;  %v5426_v11 = vld [vmem:[%s7750_s9 + $0x8] sm:$0xff] }
 0x5e4   : > { %6196 = vmatprep.mubr.msk.f32.mxu0 %vm6633_vm3, %v7415_v15  ;;  %vm5556_vm3 = vcmask 130048  }
 0x6b6   : > { %v5419_v45 = vpop.f32.mrb[0].mxu0 }
 0x6b7   : > { %v6296_v46 = vadd.f32 %v5419_v45, %v485_v41  ;;  %v6186_v48 = vpop.f32.mrb[1].mxu0 }
 0x6b9   : > { %v5424_v49 = vmax.f32 %v6296_v46, 0.0 }
 0x6bb   : > { %6187 = vmatprep.subr.msk.mxu1 %vm5436_vm2, %v5424_v49 }
 0x6bc   : > { %6188 = vmatpush3.msk.msra.mxu1 %vm5436_vm2, %v5424_v49 }
 0x6bd   : > { %6190 = vmatmul.mubr.msk.f32.vlgmr.msra.gmra.mrb[8].mxu1 %vm5429_vm4, %v5426_v11 }
 0x6be   : > { %5624 = vmatprep.mubr.f32.mxu1 %v7415_v15 }
 0x790   : > { %v6191_v28 = vpop.f32.mrb[8].mxu1 }
 0x791   : > { %v5512_v51 = vadd.f32 %v6191_v28, %v5428_v50  ;;  %v5506_v47 = vpop.f32.mrb[9].mxu1 }
 0x792   : > { %v5507_v60 = vadd.f32 %v5506_v47, %v5427_v57 }
 0x793   : > { %v5516_v6 = vsub.f32 0.0, %v5512_v51 }
 0x794   : > { %v5515_v52 = vsub.f32 0.0, %v5507_v60 }
 0x795   : > { %v5519_v55 = vmul.f32 1.442695, %v5516_v6 }
 0x796   : > { %v5517_v30 = vmul.f32 1.442695, %v5515_v52 }
 0x797   : > { %6552 = vpow2.f32 %v5519_v55 }
 0x798   : > { %6554 = vpow2.f32 %v5517_v30 }
 0x7a1   : > { %v6553_v36 = vpop.eup %6552 }
 0x7a2   : > { %v6555_v15 = vpop.eup %6554  ;;  %v5522_v18 = vadd.f32 1.0, %v6553_v36 }
 0x7a3   : > { %v5521_v43 = vadd.f32 1.0, %v6555_v15 }
 0x7a5   : > { %6556 = vrcp.f32 %v5521_v43 }
 0x7a6   : > { %6558 = vrcp.f32 %v5522_v18 }
 0x7af   : > { %v6557_v53 = vpop.eup %6556 }
 0x7b0   : > { %5535 = vperm.xlu1 %6410, %v6557_v53   ;;  %v6559_v56 = vpop.eup %6558 }
 0x7b4   : > { %5540 = vperm.xlu1 %6410, %v6559_v56  }
 0x7b8   : > { %5553 = vperm.xlu1 %6410, %v5550_v58  }
 0x82f   : > { %v5536_v59 = vpop.permute.xlu1 %5535 }
 0x830   : > { %v5543_v14 = vmul.f32 %v5536_v59, %v5527_v62  ;;  %v5544_v44 = vmul.f32 %v5536_v59, %v5528_v63  ;;  %v5545_v13 = vmul.f32 %v5536_v59, %v5529_v1 }
 0x833   : > { %v5541_v8 = vpop.permute.xlu1 %5540 }
 0x834   : > { %v5546_v42 = vmul.f32 %v5541_v8, %v5530_v16  ;;  %v5547_v37 = vmul.f32 %v5541_v8, %v5531_v9  ;;  %v5548_v27 = vmul.f32 %v5541_v8, %v5532_v22 }
 0x836   : > { %v6291_v39 = vpack.c.bf16 %v5546_v42, %v5543_v14  ;;  %v6294_v10 = vpack.c.bf16 %v5548_v27, %v5545_v13  ;;  %v6289_v12 = vpack.c.bf16 %v5547_v37, %v5544_v44 }
 0x837   : > { %v5554_v61 = vpop.permute.xlu1 %5553 }
 0x838   : > { %6290 = vmatprep.subr.bf16.mxu1 %v6289_v12  ;;  %6295 = vmatpush3.bf16.msra.mxu0 %v6294_v10 }
 0x839   : > { %6292 = vmatpush1.bf16.msra.mxu1 %v6291_v39 }
 0x83b   : > { %6197 = vmatmul.mubr.msk.f32.vlgmr.msra.gmra.mrb[54].mxu0 %vm5556_vm3, %v5549_v19 }
 0x83c   : > { %5932 = vmatmul.mubr.msk.f32.vlgmr.msra.gmra.mrb[10].mxu1 %vm5556_vm3, %v5549_v19 }
 0x90e   : > { %v5697_v17 = vpop.f32.mrb[54].mxu0 }
 0x90f   : > { %v5698_v34 = vadd.f32 %v5697_v17, %v5554_v61  ;;  %v5626_v38 = vpop.f32.mrb[10].mxu1  ;;  %v6198_v7 = vpop.f32.mrb[55].mxu0 }
 0x910   : > { %v5627_v54 = vadd.f32 %v5626_v38, %v5554_v61  ;;  %v5628_v31 = vpop.f32.mrb[11].mxu1 }
 0x911   : > { %v5703_v0 = vadd.f32 %v5698_v34, %v6779_v3  ;;  %v5629_v20 = vadd.f32 %v5628_v31, %v5554_v61 }
 0x912   : > { %v5701_v21 = vadd.f32 %v5627_v54, %v6777_v2 }
 0x913   : > { %v5702_v24 = vadd.f32 %v5629_v20, %v6786_v4  ;;  %5709 = vst.msk [vmem:[%s460_s26 + $0x8] sm:$0xf] %vm482_vm1, %v5703_v0 }
 0x915   : > { %v5706_v25 = vcombine.low %v5701_v21, %v5702_v24 }
 0x917   : > { %5708 = vst [vmem:[%s460_s26] sm:$0xff] %v5706_v25 }
 0x918   : > { %6575 = shalt.err (!%p6572_p3)
}
 0x919   : > { %s6576_s28 = scalar_lea.hbm %s7699_s13, 192  ;;  %s6580_s26 = scalar_lea.hbm %s7755_s14, 384 }
 0x91a   : > { %p6577_p4 = scmp.ne.s32.totalorder %s7699_s13, %s6576_s28  ;;  %p6581_p9 = scmp.lt.u32.totalorder %s7699_s13, %s7755_s14 }
 0x91b   : > { %p6582_p10 = scmp.lt.u32.totalorder %s6580_s26, %s6576_s28  ;;  %p6584_p12 = scmp.lt.u32.totalorder %s6576_s28, %s7699_s13 }
 0x91c   : > { %p6578_p7 = pnand %p6577_p4, %p6756_p5 }
 0x91d   : > { %p6583_p11 = por %p6582_p10, %p6581_p9 }
 0x91e   : > { %p6579_p8 = pneg %p6578_p7 }
 0x91f   : > { %p6585_p13 = por %p6584_p12, %p6583_p11 }
 0x921   : > { %p6586_p0 = pnand %p6585_p13, %p6579_p8 }
 0x923   : > { %6589 = shalt.err (!%p6586_p0)
}
 0x924   : > { %6354 = dma.vmem_to_hbm [thread:$0]  (%p6756_p5), %s7701_s21, 192, %s7699_s13, %s5711_s17  }
 0x925 PF: > { %p6360_p1 = scmp.ge.s32.totalorder %s6624_s16, 2  ;;  %s5737_s1 = sand.u32 1, %s6612_s29  }
 0x926   : > { %s5738_s25 = scalar_lea.sflag [#allocation4], %s5737_s1 }
 0x927   : > { %p6357_p2 = pnand %p6360_p1, %p6760_p6 }
 0x929   : > { %6607 = dma.done.wait (!%p6357_p2), %s5738_s25, 192  }
 0x92a   : > { %6609 = vsyncadd (!%p6357_p2), %s5738_s25, 4294967104  ;;  %p24_p3 = scmp.ge.s32.totalorder %s6743_s19, 4   ;;  %s7794_s29 = smov %s6616_s30 }
 0x92b   : > { %s7795_s30 = smov %s6620_s15  ;;  %s7796_s15 = smov %s6754_s22 }
 0x92c   : > { %s7797_s16 = smov %s6743_s19  ;;  %26 = sbr.rel (!%p24_p3) target bundleno = 9 (0x9), region = 135 }
 0x933   :  { %5743 = vsyncpa [#allocation4], 1 }
 0x934   :  { %5745 = vsyncpa [#allocation4 + $0x1], 1 }

</bundles_post_ra>
